<compile_context>
chip_gen: v5e
topology: v5e:2x2
jax: 0.10.0
libtpu: 0.0.40
codegen_flags: <defaults>
</compile_context>

<pallas_src>
import jax
import jax.numpy as jnp
from jax.experimental import pallas as pl
from jax.experimental.pallas import tpu as pltpu

BN_EPS = 1e-5


# ----------------------------------------------------------------------------
# PyTorch-exact bilinear (align_corners=False) helpers.
# ----------------------------------------------------------------------------
def _src_index_weights(in_size, out_size):
    o = jnp.arange(out_size, dtype=jnp.float32)
    src = (o + 0.5) * (in_size / out_size) - 0.5
    src = jnp.maximum(src, 0.0)                       # PyTorch clamps negatives
    i0 = jnp.minimum(jnp.floor(src).astype(jnp.int32), in_size - 1)
    i1 = jnp.minimum(i0 + 1, in_size - 1)
    w1 = src - i0.astype(jnp.float32)
    w0 = 1.0 - w1
    return i0, i1, w0, w1


def _interp_matrix(in_size, out_size):
    """(out_size, in_size) matrix M with M @ v == 1-D bilinear resize of v."""
    i0, i1, w0, w1 = _src_index_weights(in_size, out_size)
    eye = jnp.eye(in_size, dtype=jnp.float32)
    return w0[:, None] * eye[i0] + w1[:, None] * eye[i1]


def bilinear_upsample_nhwc(x, out_h, out_w):
    """Gather-based reference upsample (PyTorch-exact), NHWC."""
    _, h, w, _ = x.shape
    hi0, hi1, hw0, hw1 = _src_index_weights(h, out_h)
    wi0, wi1, ww0, ww1 = _src_index_weights(w, out_w)
    top = x[:, hi0]
    bot = x[:, hi1]
    rows = top * hw0[None, :, None, None] + bot * hw1[None, :, None, None]
    left = rows[:, :, wi0]
    right = rows[:, :, wi1]
    return left * ww0[None, None, :, None] + right * ww1[None, None, :, None]


# ----------------------------------------------------------------------------
# Wrapper: NCHW in / NCHW out (PyTorch convention).
# ----------------------------------------------------------------------------
def upsample_blend(x_nchw, skip_nchw, params):
    x = jnp.transpose(x_nchw, (0, 2, 3, 1)).astype(jnp.float32)      # NHWC
    skip = jnp.transpose(skip_nchw, (0, 2, 3, 1)).astype(jnp.float32)
    N, Hl, Wl, C = x.shape
    _, Hs, Ws, _ = skip.shape

    # Free layout changes in the wrapper: keep C in the lane dim.
    x_flat = x.reshape(N, Hl * Wl, C)                                 # (N, Hl*Wl, C)
    skip_flat = skip.reshape(N, Hs * Ws, C)                           # (N, Hs*Ws, C)

    # Fused bilinear-upsample matrix (separable weights combined via kron).
    a_up = jnp.kron(_interp_matrix(Hl, Hs), _interp_matrix(Wl, Ws))   # (Hs*Ws, Hl*Wl)

    # Fold BN (running stats) into a per-channel affine.
    scale_c = params["gamma"] / jnp.sqrt(params["var"] + BN_EPS)
    shift_c = params["beta"] - params["mean"] * scale_c
    scale = scale_c.reshape(1, C)
    shift = shift_c.reshape(1, C)

    # Conv weight: OIHW -> HWIO -> packed (9*C, Cout), bf16 MXU operands.
    w_hwio = jnp.transpose(params["w"], (2, 3, 1, 0))                 # (3,3,Cin,Cout)
    Cout = w_hwio.shape[3]
    w_packed = w_hwio.reshape(9 * C, Cout).astype(jnp.bfloat16)

    W_OFF = 8  # sublane-aligned column offset of the conv interior in scratch

    def kernel(x_ref, skip_ref, a_ref, scale_ref, shift_ref, w_ref, o_ref,
               pad_ref):
        # 1) fused bilinear upsample: single f32 MXU matmul.
        x_up = jnp.dot(a_ref[...], x_ref[0],
                       preferred_element_type=jnp.float32)            # (Hs*Ws, C)

        # 2) + skip, folded BatchNorm affine, ReLU (f32 VPU math).
        y = jnp.maximum((x_up + skip_ref[0]) * scale_ref[...] + shift_ref[...],
                        0.0)

        # 3) one zero fill + one aligned interior store into the padded
        #    VMEM scratch (replaces the old concatenate-based padding).
        pad_ref[...] = jnp.zeros(pad_ref.shape, pad_ref.dtype)
        pad_ref[pl.ds(1, Hs), pl.ds(W_OFF, Ws), :] = y.reshape(Hs, Ws, C)

        # 4) im2col slab (Hs*Ws, 9*C) + a single K = 9*C bf16 MXU matmul
        #    (f32 accumulation).  Windows read at sublane offsets 7/8/9.
        cols = []
        for dy in range(3):
            for dx in range(3):
                win = pad_ref[pl.ds(dy, Hs), pl.ds(W_OFF - 1 + dx, Ws), :]
                cols.append(win.reshape(Hs * Ws, C))
        slab = jnp.concatenate(cols, axis=-1).astype(jnp.bfloat16)     # (Hs*Ws, 9C)
        out = jnp.dot(slab, w_ref[...], preferred_element_type=jnp.float32)

        # 5) lane-dense output store (Cout = 128 lanes -> unmasked vst).
        o_ref[...] = out.reshape(1, Hs * Ws, Cout).astype(o_ref.dtype)

    out_flat = pl.pallas_call(
        kernel,
        out_shape=jax.ShapeDtypeStruct((N, Hs * Ws, Cout), jnp.float32),
        grid_spec=pltpu.PrefetchScalarGridSpec(
            num_scalar_prefetch=0,
            grid=(N,),
            in_specs=[
                pl.BlockSpec((1, Hl * Wl, C), lambda n: (n, 0, 0)),    # x (low-res)
                pl.BlockSpec((1, Hs * Ws, C), lambda n: (n, 0, 0)),    # skip
                pl.BlockSpec((Hs * Ws, Hl * Wl), lambda n: (0, 0)),    # upsample mat
                pl.BlockSpec((1, C), lambda n: (0, 0)),                # BN scale
                pl.BlockSpec((1, C), lambda n: (0, 0)),                # BN shift
                pl.BlockSpec((9 * C, Cout), lambda n: (0, 0)),         # conv weight
            ],
            out_specs=pl.BlockSpec((1, Hs * Ws, Cout), lambda n: (n, 0, 0)),
            scratch_shapes=[
                pltpu.VMEM((Hs + 2, Ws + 2 * W_OFF, C), jnp.float32),  # padded act
            ],
        ),
        compiler_params=pltpu.CompilerParams(
            dimension_semantics=("parallel",),
            vmem_limit_bytes=32 * 1024 * 1024,
        ),
    )(x_flat, skip_flat, a_up, scale, shift, w_packed)

    out = out_flat.reshape(N, Hs, Ws, Cout)
    return jnp.transpose(out, (0, 3, 1, 2))                           # NCHW


# ----------------------------------------------------------------------------
# Pure-JAX reference (full f32) for a sanity check.
# ----------------------------------------------------------------------------
def reference(x_nchw, skip_nchw, params):
    x = jnp.transpose(x_nchw, (0, 2, 3, 1)).astype(jnp.float32)
    skip = jnp.transpose(skip_nchw, (0, 2, 3, 1)).astype(jnp.float32)
    _, Hs, Ws, _ = skip.shape
    z = bilinear_upsample_nhwc(x, Hs, Ws) + skip
    scale_c = params["gamma"] / jnp.sqrt(params["var"] + BN_EPS)
    shift_c = params["beta"] - params["mean"] * scale_c
    y = jnp.maximum(z * scale_c + shift_c, 0.0)
    w_hwio = jnp.transpose(params["w"], (2, 3, 1, 0))
    out = jax.lax.conv_general_dilated(
        y, w_hwio, window_strides=(1, 1), padding="SAME",
        dimension_numbers=("NHWC", "HWIO", "NHWC"))
    return jnp.transpose(out, (0, 3, 1, 2))


if __name__ == "__main__":
    key = jax.random.PRNGKey(0)
    k_x, k_skip, k_g, k_b, k_m, k_v, k_w = jax.random.split(key, 7)

    N, C = 2, 128          # RFNet uses num_features = 128
    H_lo, W_lo = 8, 8      # low-res feature map (to be upsampled)
    H_hi, W_hi = 16, 16    # skip-connection resolution

    x = jax.random.normal(k_x, (N, C, H_lo, W_lo), dtype=jnp.float32)
    skip = jax.random.normal(k_skip, (N, C, H_hi, W_hi), dtype=jnp.float32)

    params = {
        # BatchNorm2d(C) — running stats (inference semantics)
        "gamma": 0.5 + jax.random.uniform(k_g, (C,), dtype=jnp.float32),
        "beta": 0.1 * jax.random.normal(k_b, (C,), dtype=jnp.float32),
        "mean": 0.1 * jax.random.normal(k_m, (C,), dtype=jnp.float32),
        "var": 0.5 + jax.random.uniform(k_v, (C,), dtype=jnp.float32),
        # Conv2d(C, C, k=3, padding=1, bias=False), OIHW
        "w": 0.05 * jax.random.normal(k_w, (C, C, 3, 3), dtype=jnp.float32),
    }

    out = jax.block_until_ready(upsample_blend(x, skip, params))
    ref = jax.block_until_ready(reference(x, skip, params))

    assert out.shape == (N, C, H_hi, W_hi), out.shape
    # Conv MXU operands are bf16 (f32 accumulate) -> relative tolerance.
    max_err = float(jnp.max(jnp.abs(out - ref)))
    ref_scale = float(jnp.max(jnp.abs(ref)))
    assert max_err / (ref_scale + 1e-12) < 2e-2, (max_err, ref_scale)
    print("KERNEL_OK")
</pallas_src>

<mosaic_0001>
module attributes {stable_mosaic.version = 11 : i64} {
  func.func @kernel(%arg0: i32, %arg1: memref<1x64x128xf32, #tpu.memory_space<vmem>>, %arg2: memref<1x256x128xf32, #tpu.memory_space<vmem>>, %arg3: memref<256x64xf32, #tpu.memory_space<vmem>>, %arg4: memref<1x128xf32, #tpu.memory_space<vmem>>, %arg5: memref<1x128xf32, #tpu.memory_space<vmem>>, %arg6: memref<1152x128xbf16, #tpu.memory_space<vmem>>, %arg7: memref<1x256x128xf32, #tpu.memory_space<vmem>>, %arg8: memref<18x32x128xf32, #tpu.memory_space<vmem>>) attributes {dimension_semantics = [#tpu.dimension_semantics<parallel>], iteration_bounds = array<i64: 2>, scalar_prefetch = 0 : i64, scratch_operands = 1 : i64, tpu.core_type = #tpu.core_type<tc>, window_params = [{transform_indices = @transform_0, window_bounds = array<i64: 1, 64, 128>}, {transform_indices = @transform_1, window_bounds = array<i64: 1, 256, 128>}, {pipeline_mode = #tpu.pipeline_mode<synchronous>, transform_indices = @transform_2, window_bounds = array<i64: 256, 64>}, {pipeline_mode = #tpu.pipeline_mode<synchronous>, transform_indices = @transform_3, window_bounds = array<i64: 1, 128>}, {pipeline_mode = #tpu.pipeline_mode<synchronous>, transform_indices = @transform_4, window_bounds = array<i64: 1, 128>}, {pipeline_mode = #tpu.pipeline_mode<synchronous>, transform_indices = @transform_5, window_bounds = array<i64: 1152, 128>}, {transform_indices = @transform_6, window_bounds = array<i64: 1, 256, 128>}]} {
    %c0 = arith.constant 0 : index
    %c0_0 = arith.constant 0 : index
    %0 = vector.load %arg3[%c0, %c0_0] : memref<256x64xf32, #tpu.memory_space<vmem>>, vector<256x64xf32>
    %c0_1 = arith.constant 0 : index
    %c0_2 = arith.constant 0 : index
    %c0_3 = arith.constant 0 : index
    %1 = vector.load %arg1[%c0_1, %c0_2, %c0_3] : memref<1x64x128xf32, #tpu.memory_space<vmem>>, vector<1x64x128xf32>
    %2 = vector.shape_cast %1 : vector<1x64x128xf32> to vector<64x128xf32>
    %cst = arith.constant dense<0.000000e+00> : vector<256x128xf32>
    %3 = tpu.matmul %0, %2, %cst {dimension_numbers = #tpu.dot_dimension_numbers<[1], [0], [0], [1], [0, 0, 1, 1], [], []>} : vector<256x64xf32>, vector<64x128xf32>, vector<256x128xf32> -> vector<256x128xf32>
    %c0_4 = arith.constant 0 : index
    %c0_5 = arith.constant 0 : index
    %c0_6 = arith.constant 0 : index
    %4 = vector.load %arg2[%c0_4, %c0_5, %c0_6] : memref<1x256x128xf32, #tpu.memory_space<vmem>>, vector<1x256x128xf32>
    %5 = vector.shape_cast %4 : vector<1x256x128xf32> to vector<256x128xf32>
    %6 = arith.addf %3, %5 : vector<256x128xf32>
    %c0_7 = arith.constant 0 : index
    %c0_8 = arith.constant 0 : index
    %7 = vector.load %arg4[%c0_7, %c0_8] : memref<1x128xf32, #tpu.memory_space<vmem>>, vector<1x128xf32>
    %8 = vector.broadcast %7 : vector<1x128xf32> to vector<256x128xf32>
    %9 = arith.mulf %6, %8 : vector<256x128xf32>
    %c0_9 = arith.constant 0 : index
    %c0_10 = arith.constant 0 : index
    %10 = vector.load %arg5[%c0_9, %c0_10] : memref<1x128xf32, #tpu.memory_space<vmem>>, vector<1x128xf32>
    %11 = vector.broadcast %10 : vector<1x128xf32> to vector<256x128xf32>
    %12 = arith.addf %9, %11 : vector<256x128xf32>
    %cst_11 = arith.constant 0.000000e+00 : f32
    %13 = vector.broadcast %cst_11 : f32 to vector<256x128xf32>
    %14 = arith.maximumf %12, %13 : vector<256x128xf32>
    %cst_12 = arith.constant 0.000000e+00 : f32
    %15 = vector.broadcast %cst_12 : f32 to vector<18x32x128xf32>
    %c0_13 = arith.constant 0 : index
    %c0_14 = arith.constant 0 : index
    %c0_15 = arith.constant 0 : index
    %16 = vector.load %arg8[%c0_13, %c0_14, %c0_15] : memref<18x32x128xf32, #tpu.memory_space<vmem>>, vector<18x32x128xf32>
    tpu.vector_store %arg8[%c0_13, %c0_14, %c0_15], %15 {strides = array<i32>} : memref<18x32x128xf32, #tpu.memory_space<vmem>>, vector<18x32x128xf32>,
    %17 = vector.shape_cast %14 : vector<256x128xf32> to vector<16x16x128xf32>
    %c1 = arith.constant 1 : index
    %c8 = arith.constant 8 : index
    %c0_16 = arith.constant 0 : index
    %18 = vector.load %arg8[%c1, %c8, %c0_16] : memref<18x32x128xf32, #tpu.memory_space<vmem>>, vector<16x16x128xf32>
    tpu.vector_store %arg8[%c1, %c8, %c0_16], %17 {strides = array<i32>} : memref<18x32x128xf32, #tpu.memory_space<vmem>>, vector<16x16x128xf32>,
    %c0_17 = arith.constant 0 : index
    %c7 = arith.constant 7 : index
    %c0_18 = arith.constant 0 : index
    %19 = vector.load %arg8[%c0_17, %c7, %c0_18] : memref<18x32x128xf32, #tpu.memory_space<vmem>>, vector<16x16x128xf32>
    %20 = vector.shape_cast %19 : vector<16x16x128xf32> to vector<256x128xf32>
    %c0_19 = arith.constant 0 : index
    %c8_20 = arith.constant 8 : index
    %c0_21 = arith.constant 0 : index
    %21 = vector.load %arg8[%c0_19, %c8_20, %c0_21] : memref<18x32x128xf32, #tpu.memory_space<vmem>>, vector<16x16x128xf32>
    %22 = vector.shape_cast %21 : vector<16x16x128xf32> to vector<256x128xf32>
    %c0_22 = arith.constant 0 : index
    %c9 = arith.constant 9 : index
    %c0_23 = arith.constant 0 : index
    %23 = vector.load %arg8[%c0_22, %c9, %c0_23] : memref<18x32x128xf32, #tpu.memory_space<vmem>>, vector<16x16x128xf32>
    %24 = vector.shape_cast %23 : vector<16x16x128xf32> to vector<256x128xf32>
    %c1_24 = arith.constant 1 : index
    %c7_25 = arith.constant 7 : index
    %c0_26 = arith.constant 0 : index
    %25 = vector.load %arg8[%c1_24, %c7_25, %c0_26] : memref<18x32x128xf32, #tpu.memory_space<vmem>>, vector<16x16x128xf32>
    %26 = vector.shape_cast %25 : vector<16x16x128xf32> to vector<256x128xf32>
    %c1_27 = arith.constant 1 : index
    %c8_28 = arith.constant 8 : index
    %c0_29 = arith.constant 0 : index
    %27 = vector.load %arg8[%c1_27, %c8_28, %c0_29] : memref<18x32x128xf32, #tpu.memory_space<vmem>>, vector<16x16x128xf32>
    %28 = vector.shape_cast %27 : vector<16x16x128xf32> to vector<256x128xf32>
    %c1_30 = arith.constant 1 : index
    %c9_31 = arith.constant 9 : index
    %c0_32 = arith.constant 0 : index
    %29 = vector.load %arg8[%c1_30, %c9_31, %c0_32] : memref<18x32x128xf32, #tpu.memory_space<vmem>>, vector<16x16x128xf32>
    %30 = vector.shape_cast %29 : vector<16x16x128xf32> to vector<256x128xf32>
    %c2 = arith.constant 2 : index
    %c7_33 = arith.constant 7 : index
    %c0_34 = arith.constant 0 : index
    %31 = vector.load %arg8[%c2, %c7_33, %c0_34] : memref<18x32x128xf32, #tpu.memory_space<vmem>>, vector<16x16x128xf32>
    %32 = vector.shape_cast %31 : vector<16x16x128xf32> to vector<256x128xf32>
    %c2_35 = arith.constant 2 : index
    %c8_36 = arith.constant 8 : index
    %c0_37 = arith.constant 0 : index
    %33 = vector.load %arg8[%c2_35, %c8_36, %c0_37] : memref<18x32x128xf32, #tpu.memory_space<vmem>>, vector<16x16x128xf32>
    %34 = vector.shape_cast %33 : vector<16x16x128xf32> to vector<256x128xf32>
    %c2_38 = arith.constant 2 : index
    %c9_39 = arith.constant 9 : index
    %c0_40 = arith.constant 0 : index
    %35 = vector.load %arg8[%c2_38, %c9_39, %c0_40] : memref<18x32x128xf32, #tpu.memory_space<vmem>>, vector<16x16x128xf32>
    %36 = vector.shape_cast %35 : vector<16x16x128xf32> to vector<256x128xf32>
    %37 = tpu.concatenate %20, %22, %24, %26, %28, %30, %32, %34, %36 in 1 : vector<256x128xf32>, vector<256x128xf32>, vector<256x128xf32>, vector<256x128xf32>, vector<256x128xf32>, vector<256x128xf32>, vector<256x128xf32>, vector<256x128xf32>, vector<256x128xf32> -> vector<256x1152xf32>
    %38 = arith.truncf %37 : vector<256x1152xf32> to vector<256x1152xbf16>
    %c0_41 = arith.constant 0 : index
    %c0_42 = arith.constant 0 : index
    %39 = vector.load %arg6[%c0_41, %c0_42] : memref<1152x128xbf16, #tpu.memory_space<vmem>>, vector<1152x128xbf16>
    %cst_43 = arith.constant dense<0.000000e+00> : vector<256x128xf32>
    %40 = tpu.matmul %38, %39, %cst_43 {dimension_numbers = #tpu.dot_dimension_numbers<[1], [0], [0], [1], [0, 0, 1, 1], [], []>} : vector<256x1152xbf16>, vector<1152x128xbf16>, vector<256x128xf32> -> vector<256x128xf32>
    %41 = vector.shape_cast %40 : vector<256x128xf32> to vector<1x256x128xf32>
    %c0_44 = arith.constant 0 : index
    %c0_45 = arith.constant 0 : index
    %c0_46 = arith.constant 0 : index
    %42 = vector.load %arg7[%c0_44, %c0_45, %c0_46] : memref<1x256x128xf32, #tpu.memory_space<vmem>>, vector<1x256x128xf32>
    tpu.vector_store %arg7[%c0_44, %c0_45, %c0_46], %41 {strides = array<i32>} : memref<1x256x128xf32, #tpu.memory_space<vmem>>, vector<1x256x128xf32>,
    return
  }
  func.func @transform_0(%arg0: i32) -> (i32, i32, i32) {
    %c0_i32 = arith.constant 0 : i32
    %c0_i32_0 = arith.constant 0 : i32
    %c0_i32_1 = arith.constant 0 : i32
    return %arg0, %c0_i32, %c0_i32_0 : i32, i32, i32
  }
  func.func @transform_1(%arg0: i32) -> (i32, i32, i32) {
    %c0_i32 = arith.constant 0 : i32
    %c0_i32_0 = arith.constant 0 : i32
    %c0_i32_1 = arith.constant 0 : i32
    return %arg0, %c0_i32, %c0_i32_0 : i32, i32, i32
  }
  func.func @transform_2(%arg0: i32) -> (i32, i32) {
    %c0_i32 = arith.constant 0 : i32
    %c0_i32_0 = arith.constant 0 : i32
    %c0_i32_1 = arith.constant 0 : i32
    return %c0_i32, %c0_i32_0 : i32, i32
  }
  func.func @transform_3(%arg0: i32) -> (i32, i32) {
    %c0_i32 = arith.constant 0 : i32
    %c0_i32_0 = arith.constant 0 : i32
    %c0_i32_1 = arith.constant 0 : i32
    return %c0_i32, %c0_i32_0 : i32, i32
  }
  func.func @transform_4(%arg0: i32) -> (i32, i32) {
    %c0_i32 = arith.constant 0 : i32
    %c0_i32_0 = arith.constant 0 : i32
    %c0_i32_1 = arith.constant 0 : i32
    return %c0_i32, %c0_i32_0 : i32, i32
  }
  func.func @transform_5(%arg0: i32) -> (i32, i32) {
    %c0_i32 = arith.constant 0 : i32
    %c0_i32_0 = arith.constant 0 : i32
    %c0_i32_1 = arith.constant 0 : i32
    return %c0_i32, %c0_i32_0 : i32, i32
  }
  func.func @transform_6(%arg0: i32) -> (i32, i32, i32) {
    %c0_i32 = arith.constant 0 : i32
    %c0_i32_0 = arith.constant 0 : i32
    %c0_i32_1 = arith.constant 0 : i32
    return %arg0, %c0_i32, %c0_i32_0 : i32, i32, i32
  }
}

</mosaic_0001>

<bundles_post_ra>
// kernel: tpu_custom_call.1
= control target key start
LH: loop header
LB: loop body
LE: loop exit
PB: predicated region body
PF: predicated region fallthrough
CT: control target
= control target key end

     0   :  { %11 = vsyncpa [#allocation4], 0  ;;  %s4681_s0 = inlined_call_operand.vmem [shape: f32[2,64,128], index: 0, kind: input, shape index: {}]   ;;  %s4682_s1 = inlined_call_operand.hbm [shape: f32[2,256,128], index: 1, kind: input, shape index: {}]   ;;  %s4683_s2 = inlined_call_operand.vmem [shape: f32[256,64], index: 2, kind: input, shape index: {}]   ;;  %s4684_s3 = inlined_call_operand.vmem [shape: f32[1,128], index: 3, kind: input, shape index: {}]   ;;  %s4685_s4 = inlined_call_operand.vmem [shape: f32[1,128], index: 4, kind: input, shape index: {}]   ;;  %s4686_s5 = inlined_call_operand.hbm [shape: bf16[1152,128], index: 5, kind: input, shape index: {}]   ;;  %s4687_s6 = inlined_call_operand.hbm [shape: f32[2,256,128], index: 6, kind: output, shape index: {}]  }
   0x1   :  { %13 = vsyncpa [#allocation4 + $0x1], 0 }
   0x2   :  { %14 = vsyncpa [#allocation7], 0 }
   0x3   :  { %15 = vsyncpa [#allocation5], 0 }
   0x4   :  { %17 = vsyncpa [#allocation5 + $0x1], 0  ;;  %s3424_s21 = smov 0   ;;  %s3426_s22 = smov 0  }
   0x5   :  { %s3428_s23 = smov 0   ;;  %s3430_s24 = smov 0  }
   0x6 LB: > { %s3445_s25 = sadd.s32 4294967295, %s3379_s24   ;;  %s2753_s26 = sadd.s32 4294967294, %s3379_s24   ;;  %s3379_s24 = sphi %s3430_s24, %s4972_s24   ;;  %s3375_s23 = sphi %s3428_s23, %s4971_s23   ;;  %s3371_s22 = sphi %s3426_s22, %s4970_s22   ;;  %s3367_s21 = sphi %s3424_s21, %s4969_s21  }
   0x7   : > { %p69_p0 = scmp.ne.s32.totalorder %s3371_s22, %s3367_s21  ;;  %p70_p1 = scmp.eq.s32.totalorder %s3445_s25, 0 }
   0x8   : > { %p177_p2 = scmp.eq.s32.totalorder %s3445_s25, 1  ;;  %p183_p3 = scmp.eq.s32.totalorder %s2753_s26, 1 }
   0x9   : > { %p3454_p4 = por %p70_p1, %p69_p0  ;;  %p2754_p5 = scmp.ge.s32.totalorder %s3379_s24, 1 }
   0xa   : > { %p3459_p6 = por %p183_p3, %p69_p0  ;;  %p190_p7 = scmp.lt.s32.totalorder %s3379_s24, 3 }
   0xb   : > { %s210_s7 = sshll.u32 %s4686_s5, 4  ;;  %s3381_s9 = smov [#allocation6]   ;;  %s211_s7 = int_to_ptr.hbm [resolvable:$true] %s210_s7 }
   0xc   : > { %p3467_p8 = pnand %p2754_p5, %p190_p7  ;;  %s212_s10 = sshll.u32 %s3381_s9, 4  ;;  %s213_s10 = int_to_ptr.vmem [resolvable:$true] %s212_s10 }
   0xd   : > { %s3477_s11 = sadd.s32 1, %s3379_s24   ;;  %s3382_s12 = smov 64  }
   0xe   : > { %p3190_p9 = pneg %p3467_p8  ;;  %s3383_s13 = smov 4  }
   0xf   : > { %s53_s14 = ssub.s32 %s3379_s24, %s3477_s11  ;;  %s56_s15 = sadd.s32 1, %s3375_s23 }
  0x10   : > { %p3191_p10 = pnand %p3190_p9, %p70_p1  ;;  %p54_p12 = scmp.eq.s32.totalorder %s53_s14, 0 }
  0x11   : > { %p63_p13 = scmp.ne.s32.totalorder %s3375_s23, %s3371_s22  ;;  %p64_p0 = scmp.eq.s32.totalorder %s3379_s24, 0 }
  0x12   : > { %3193 = dma.hbm_to_vmem [thread:$0]  (!%p3191_p10), %s211_s7, 9216, %s213_s10, [#allocation7], %s3382_s12, %s3382_s12, %s3383_s13  }
  0x13   : > { %p3203_p3 = scmp.lt.s32.totalorder %s3379_s24, 2  ;;  %p65_p5 = por %p64_p0, %p63_p13 }
  0x14   : > { %s3487_s16 = scalar_select %p54_p12, %s3375_s23, %s56_s15  }
  0x15   : > { %p3491_p7 = por %p177_p2, %p63_p13  ;;  %s234_s18 = sand.u32 1, %s3375_s23  }
  0x16   : > { %s3091_s19 = sshll.u32 %s3379_s24, 8  ;;  %s2757_s20 = sshll.u32 %s234_s18, 8 }
  0x17   : > { %s243_s30 = scalar_lea.hbm %s4682_s1, %s3091_s19  ;;  %s238_s9 = scalar_lea.vmem [#allocation3], %s2757_s20 }
  0x18   : > { %s244_s7 = sshll.u32 %s243_s30, 4  ;;  %s246_s10 = sshll.u32 %s238_s9, 4  ;;  %s245_s7 = int_to_ptr.hbm [resolvable:$true] %s244_s7  ;;  %s247_s10 = int_to_ptr.vmem [resolvable:$true] %s246_s10 }
  0x19   : > { %p3502_p9 = pnand %p3203_p3, %p65_p5  ;;  %s235_s13 = scalar_lea.sflag [#allocation4], %s234_s18 }
  0x1a   : > { %s3279_s14 = sshra.s32 %s245_s7, 4  ;;  %s3286_s26 = scalar_lea.hbm %s4682_s1, 512  ;;  %s3280_s14 = int_to_ptr.hbm [resolvable:$true] %s3279_s14 }
  0x1b   : > { %s3281_s15 = scalar_lea.hbm %s3280_s14, 256  ;;  %p3283_p10 = pneg %p3502_p9 }
  0x1c   : > { %p3282_p2 = scmp.ne.s32.totalorder %s3280_s14, %s3281_s15  ;;  %p3287_p0 = scmp.lt.s32.totalorder %s3280_s14, %s4682_s1 }
  0x1d   : > { %p3288_p3 = scmp.lt.s32.totalorder %s3286_s26, %s3281_s15 }
  0x1e   : > { %p3284_p12 = pnand %p3283_p10, %p3282_p2 }
  0x1f   : > { %p3289_p5 = por %p3288_p3, %p3287_p0 }
  0x20   : > { %p3285_p13 = pneg %p3284_p12 }
  0x22   : > { %p3290_p11 = pnand %p3289_p5, %p3285_p13 }
  0x24   : > { %3293 = shalt.err (!%p3290_p11)
}
  0x25   : > { %s3384_s18 = smov 128   ;;  %s3385_s9 = smov 8  }
  0x26   : > { %3197 = dma.hbm_to_vmem [thread:$0]  (!%p3502_p9), %s245_s7, 4096, %s247_s10, %s235_s13, %s3384_s18, %s3384_s18, %s3385_s9  }
  0x27   : > { %258 = sbr.rel (%p3467_p8) target bundleno = 1112 (0x458), region = 44 }
  0x2c   : > { %s3519_s19 = sand.u32 1, %s3371_s22  }
  0x2d   : > { %s2761_s14 = sshll.u32 %s3519_s19, 8  ;;  %s261_s15 = scalar_lea.sflag [#allocation4], %s3519_s19 }
  0x2e   : > { %s3525_s20 = scalar_lea.vmem [#allocation3], %s2761_s14 }
  0x2f   : > { %3354 = dma.done.wait (%p3454_p4), %s261_s15, 4096  }
  0x30   : > { %3356 = vsyncadd (%p3454_p4), %s261_s15, 4294963200 }
  0x31   : > { %3358 = dma.done.wait (%p70_p1), [#allocation7], 9216  }
  0x32   : > { %3360 = vsyncadd (%p70_p1), [#allocation7], 4294958080  ;;  %p304_p8 = scmp.lt.s32.totalorder %s3445_s25, 1  ;;  %v309_v8 = vld [vmem:[%s4683_s2] sm:$0xff]  ;;  %vm381_vm0 = vcmask 523264   ;;  %v326_v9 = vld [vmem:[%s4683_s2 + $0x88] sm:$0xff] }
  0x33   : > { %v310_v10 = vld [vmem:[%s4683_s2 + $0x8] sm:$0xff]  ;;  %v327_v11 = vld [vmem:[%s4683_s2 + $0x90] sm:$0xff]  ;;  %v328_v13 = vld [vmem:[%s4683_s2 + $0x98] sm:$0xff]  ;;  %v3386_v48 = vmov 0.0   ;;  %s3329_s9 = scalar_lea.hbm %s4687_s6, 512 }
  0x34   : > { %s305_s8 = scalar_select %p304_p8, %s3445_s25, 1  ;;  %v311_v12 = vld [vmem:[%s4683_s2 + $0x10] sm:$0xff]  ;;  %v312_v14 = vld [vmem:[%s4683_s2 + $0x18] sm:$0xff]  ;;  %v329_v15 = vld [vmem:[%s4683_s2 + $0xa0] sm:$0xff]  ;;  %695 = vst [vmem:[#allocation2] sm:$0xff] %v3386_v48 }
  0x35   : > { %v313_v16 = vld [vmem:[%s4683_s2 + $0x20] sm:$0xff]  ;;  %v330_v17 = vld [vmem:[%s4683_s2 + $0xa8] sm:$0xff]  ;;  %v331_v19 = vld [vmem:[%s4683_s2 + $0xb0] sm:$0xff]  ;;  %696 = vst [vmem:[#allocation2 + $0x8] sm:$0xff] %v3386_v48 }
  0x36   : > { %s3092_s7 = sshll.u32 %s305_s8, 6  ;;  %v314_v18 = vld [vmem:[%s4683_s2 + $0x28] sm:$0xff]  ;;  %v315_v20 = vld [vmem:[%s4683_s2 + $0x30] sm:$0xff]  ;;  %v332_v21 = vld [vmem:[%s4683_s2 + $0xb8] sm:$0xff]  ;;  %697 = vst [vmem:[#allocation2 + $0x10] sm:$0xff] %v3386_v48 }
  0x37   : > { %s308_s13 = scalar_lea.vmem %s4681_s0, %s3092_s7  ;;  %v316_v22 = vld [vmem:[%s4683_s2 + $0x38] sm:$0xff]  ;;  %v333_v23 = vld [vmem:[%s4683_s2 + $0xc0] sm:$0xff]  ;;  %v334_v25 = vld [vmem:[%s4683_s2 + $0xc8] sm:$0xff]  ;;  %698 = vst [vmem:[#allocation2 + $0x18] sm:$0xff] %v3386_v48 }
  0x38   : > { %v348_v0 = vld [vmem:[%s308_s13 + $0x38] sm:$0xff]  ;;  %v347_v1 = vld [vmem:[%s308_s13 + $0x30] sm:$0xff]  ;;  %v346_v2 = vld [vmem:[%s308_s13 + $0x28] sm:$0xff]  ;;  %699 = vst [vmem:[#allocation2 + $0x20] sm:$0xff] %v3386_v48 }
  0x39   : > { %486 = vmatpush.msra.mxu0 %v348_v0  ;;  %3166 = vmatpush.msra.mxu3 %v348_v0  ;;  %v345_v3 = vld [vmem:[%s308_s13 + $0x20] sm:$0xff]  ;;  %v344_v4 = vld [vmem:[%s308_s13 + $0x18] sm:$0xff]  ;;  %v343_v5 = vld [vmem:[%s308_s13 + $0x10] sm:$0xff]  ;;  %702 = vst [vmem:[#allocation2 + $0x38] sm:$0xff] %v3386_v48 }
  0x3a   : > { %v342_v6 = vld [vmem:[%s308_s13 + $0x8] sm:$0xff]  ;;  %v341_v7 = vld [vmem:[%s308_s13] sm:$0xff]  ;;  %v335_v27 = vld [vmem:[%s4683_s2 + $0xd0] sm:$0xff]  ;;  %703 = vst [vmem:[#allocation2 + $0x40] sm:$0xff] %v3386_v48 }
  0x3b   : > { %487 = vmatpush.msra.mxu0 %v347_v1  ;;  %3167 = vmatpush.msra.mxu3 %v347_v1  ;;  %v317_v24 = vld [vmem:[%s4683_s2 + $0x40] sm:$0xff]  ;;  %v318_v26 = vld [vmem:[%s4683_s2 + $0x48] sm:$0xff]  ;;  %v3100_v28 = vld [vmem:[#allocation6 + $0x38] sm:$0xff]  ;;  %706 = vst [vmem:[#allocation2 + $0x58] sm:$0xff] %v3386_v48 }
  0x3c   : > { %v3116_v29 = vld [vmem:[#allocation6 + $0xb8] sm:$0xff]  ;;  %1809 = vmatpush.bf16.msra.mxu1 %v3100_v28  ;;  %v3099_v30 = vld [vmem:[#allocation6 + $0x30] sm:$0xff]  ;;  %3174 = vmatpush.bf16.msra.mxu2 %v3100_v28  ;;  %v3098_v34 = vld [vmem:[#allocation6 + $0x28] sm:$0xff]  ;;  %707 = vst [vmem:[#allocation2 + $0x60] sm:$0xff] %v3386_v48 }
  0x3d   : > { %488 = vmatpush.msra.mxu0 %v346_v2  ;;  %3168 = vmatpush.msra.mxu3 %v346_v2  ;;  %v3115_v31 = vld [vmem:[#allocation6 + $0xb0] sm:$0xff]  ;;  %v336_v33 = vld [vmem:[%s4683_s2 + $0xd8] sm:$0xff]  ;;  %v3114_v35 = vld [vmem:[#allocation6 + $0xa8] sm:$0xff]  ;;  %710 = vst [vmem:[#allocation2 + $0x78] sm:$0xff] %v3386_v48 }
  0x3e   : > { %v319_v32 = vld [vmem:[%s4683_s2 + $0x50] sm:$0xff]  ;;  %v3097_v36 = vld [vmem:[#allocation6 + $0x20] sm:$0xff]  ;;  %v320_v38 = vld [vmem:[%s4683_s2 + $0x58] sm:$0xff]  ;;  %711 = vst [vmem:[#allocation2 + $0x80] sm:$0xff] %v3386_v48 }
  0x3f   : > { %489 = vmatpush.msra.mxu0 %v345_v3  ;;  %3169 = vmatpush.msra.mxu3 %v345_v3  ;;  %v3113_v37 = vld [vmem:[#allocation6 + $0xa0] sm:$0xff]  ;;  %v3096_v40 = vld [vmem:[#allocation6 + $0x18] sm:$0xff]  ;;  %v3095_v43 = vld [vmem:[#allocation6 + $0x10] sm:$0xff]  ;;  %714 = vst [vmem:[#allocation2 + $0x98] sm:$0xff] %v3386_v48 }
  0x40   : > { %1810 = vmatpush.bf16.msra.mxu1 %v3099_v30  ;;  %3175 = vmatpush.bf16.msra.mxu2 %v3099_v30  ;;  %v337_v39 = vld [vmem:[%s4683_s2 + $0xe0] sm:$0xff]  ;;  %v3112_v41 = vld [vmem:[#allocation6 + $0x98] sm:$0xff]  ;;  %v3111_v44 = vld [vmem:[#allocation6 + $0x90] sm:$0xff]  ;;  %715 = vst [vmem:[#allocation2 + $0xa0] sm:$0xff] %v3386_v48 }
  0x41   : > { %490 = vmatpush.msra.mxu0 %v344_v4  ;;  %3170 = vmatpush.msra.mxu3 %v344_v4  ;;  %v3124_v42 = vld [vmem:[#allocation6 + $0xf8] sm:$0xff]  ;;  %v3123_v45 = vld [vmem:[#allocation6 + $0xf0] sm:$0xff]  ;;  %v321_v46 = vld [vmem:[%s4683_s2 + $0x60] sm:$0xff]  ;;  %718 = vst [vmem:[#allocation2 + $0xb8] sm:$0xff] %v3386_v48 }
  0x42   : > { %v338_v47 = vld [vmem:[%s4683_s2 + $0xe8] sm:$0xff]  ;;  %v3093_v52 = vld [vmem:[#allocation6] sm:$0xff]  ;;  %v339_v56 = vld [vmem:[%s4683_s2 + $0xf0] sm:$0xff]  ;;  %719 = vst [vmem:[#allocation2 + $0xc0] sm:$0xff] %v3386_v48 }
  0x43   : > { %491 = vmatpush.msra.mxu0 %v343_v5  ;;  %3171 = vmatpush.msra.mxu3 %v343_v5  ;;  %v3094_v49 = vld [vmem:[#allocation6 + $0x8] sm:$0xff]  ;;  %v3109_v53 = vld [vmem:[#allocation6 + $0x80] sm:$0xff]  ;;  %v3120_v60 = vld [vmem:[#allocation6 + $0xd8] sm:$0xff]  ;;  %722 = vst [vmem:[#allocation2 + $0xd8] sm:$0xff] %v3386_v48 }
  0x44   : > { %1811 = vmatpush.bf16.msra.mxu1 %v3098_v34  ;;  %3176 = vmatpush.bf16.msra.mxu2 %v3098_v34  ;;  %v3110_v50 = vld [vmem:[#allocation6 + $0x88] sm:$0xff]  ;;  %v3121_v54 = vld [vmem:[#allocation6 + $0xe0] sm:$0xff]  ;;  %v3119_v61 = vld [vmem:[#allocation6 + $0xd0] sm:$0xff]  ;;  %723 = vst [vmem:[#allocation2 + $0xe0] sm:$0xff] %v3386_v48 }
  0x45   : > { %492 = vmatpush.msra.mxu0 %v342_v6  ;;  %3172 = vmatpush.msra.mxu3 %v342_v6  ;;  %v3122_v51 = vld [vmem:[#allocation6 + $0xe8] sm:$0xff]  ;;  %v323_v62 = vld [vmem:[%s4683_s2 + $0x70] sm:$0xff]  ;;  %v340_v63 = vld [vmem:[%s4683_s2 + $0xf8] sm:$0xff]  ;;  %726 = vst [vmem:[#allocation2 + $0xf8] sm:$0xff] %v3386_v48 }
  0x46   : > { %v322_v55 = vld [vmem:[%s4683_s2 + $0x68] sm:$0xff]  ;;  %727 = vst [vmem:[#allocation2 + $0x100] sm:$0xff] %v3386_v48  ;;  %v865_v2 = vld [vmem:[#allocation2 + $0x11] sm:$0xff]  ;;  %v3117_v3 = vld [vmem:[#allocation6 + $0xc0] sm:$0xff] }
  0x47   : > { %493 = vmatpush.msra.mxu0 %v341_v7  ;;  %3173 = vmatpush.msra.mxu3 %v341_v7  ;;  %v800_v57 = vld [vmem:[#allocation2 + $0x7] sm:$0xff]  ;;  %v801_v58 = vld [vmem:[#allocation2 + $0xf] sm:$0xff]  ;;  %730 = vst [vmem:[#allocation2 + $0x118] sm:$0xff] %v3386_v48  ;;  %v324_v5 = vld [vmem:[%s4683_s2 + $0x78] sm:$0xff] }
  0x48   : > { %2766 = vmatmul.msk.f32.vlgmr.msra.gmra.mxu0 %vm381_vm0, %v309_v8  ;;  %2783 = vmatmul.msk.f32.vlgmr.msra.gmra.mxu3 %vm381_vm0, %v326_v9  ;;  %v1089_v59 = vpack.c.bf16 %v801_v58, %v800_v57  ;;  %v3118_v0 = vld [vmem:[#allocation6 + $0xc8] sm:$0xff]  ;;  %731 = vst [vmem:[#allocation2 + $0x120] sm:$0xff] %v3386_v48  ;;  %v349_v6 = vld [vmem:[%s3525_s20] sm:$0xff] }
  0x49   : > { %1987 = vmatpush.bf16.msrb.mxu3 %v3116_v29  ;;  %1812 = vmatpush.bf16.msra.mxu1 %v3097_v36  ;;  %v864_v1 = vld [vmem:[#allocation2 + $0x9] sm:$0xff]  ;;  %734 = vst [vmem:[#allocation2 + $0x138] sm:$0xff] %v3386_v48  ;;  %v3698_v7 = vld [vmem:[%s4684_s3] ss:$0 sm:$0xff] }
  0x4a   : > { %3177 = vmatpush.bf16.msra.mxu2 %v3097_v36  ;;  %2076 = vmatpush.bf16.msrb.mxu0 %v3124_v42  ;;  %735 = vst [vmem:[#allocation2 + $0x140] sm:$0xff] %v3386_v48  ;;  %v1091_v4 = vpack.c.bf16 %v865_v2, %v864_v1  ;;  %v325_v9 = vld [vmem:[%s4683_s2 + $0x80] sm:$0xff] }
  0x4b   : > { %738 = vst [vmem:[#allocation2 + $0x158] sm:$0xff] %v3386_v48  ;;  %v353_v58 = vld [vmem:[%s3525_s20 + $0x20] sm:$0xff] }
  0x4c   : > { %739 = vst [vmem:[#allocation2 + $0x160] sm:$0xff] %v3386_v48 }
  0x4d   : > { %1988 = vmatpush.bf16.msrb.mxu3 %v3115_v31  ;;  %1813 = vmatpush.bf16.msra.mxu1 %v3096_v40  ;;  %742 = vst [vmem:[#allocation2 + $0x178] sm:$0xff] %v3386_v48 }
  0x4e   : > { %3178 = vmatpush.bf16.msra.mxu2 %v3096_v40  ;;  %2077 = vmatpush.bf16.msrb.mxu0 %v3123_v45  ;;  %743 = vst [vmem:[#allocation2 + $0x180] sm:$0xff] %v3386_v48  ;;  %v352_v40 = vld [vmem:[%s3525_s20 + $0x18] sm:$0xff] }
  0x4f   : > { %746 = vst [vmem:[#allocation2 + $0x198] sm:$0xff] %v3386_v48 }
  0x50   : > { %2767 = vmatmul.msk.f32.gmra.mxu0 %vm381_vm0, %v310_v10  ;;  %2784 = vmatmul.msk.f32.gmra.mxu3 %vm381_vm0, %v327_v11  ;;  %747 = vst [vmem:[#allocation2 + $0x1a0] sm:$0xff] %v3386_v48  ;;  %v3708_v11 = vld [vmem:[%s4685_s4] ss:$0 sm:$0xff] }
  0x51   : > { %1989 = vmatpush.bf16.msrb.mxu3 %v3114_v35  ;;  %1814 = vmatpush.bf16.msra.mxu1 %v3095_v43  ;;  %750 = vst [vmem:[#allocation2 + $0x1b8] sm:$0xff] %v3386_v48 }
  0x52   : > { %3179 = vmatpush.bf16.msra.mxu2 %v3095_v43  ;;  %2078 = vmatpush.bf16.msrb.mxu0 %v3122_v51  ;;  %751 = vst [vmem:[#allocation2 + $0x1c0] sm:$0xff] %v3386_v48 }
  0x53   : > { %754 = vst [vmem:[#allocation2 + $0x1d8] sm:$0xff] %v3386_v48 }
  0x54   : > { %755 = vst [vmem:[#allocation2 + $0x1e0] sm:$0xff] %v3386_v48 }
  0x55   : > { %1990 = vmatpush.bf16.msrb.mxu3 %v3113_v37  ;;  %1815 = vmatpush.bf16.msra.mxu1 %v3094_v49  ;;  %758 = vst [vmem:[#allocation2 + $0x1f8] sm:$0xff] %v3386_v48  ;;  %v368_v37 = vld [vmem:[%s3525_s20 + $0x98] sm:$0xff] }
  0x56   : > { %3180 = vmatpush.bf16.msra.mxu2 %v3094_v49  ;;  %2079 = vmatpush.bf16.msrb.mxu0 %v3121_v54  ;;  %759 = vst [vmem:[#allocation2 + $0x200] sm:$0xff] %v3386_v48 }
  0x57   : > { %762 = vst [vmem:[#allocation2 + $0x218] sm:$0xff] %v3386_v48 }
  0x58   : > { %2768 = vmatmul.msk.f32.gmra.mxu0 %vm381_vm0, %v311_v12  ;;  %2785 = vmatmul.msk.f32.gmra.mxu3 %vm381_vm0, %v328_v13  ;;  %v366_v13 = vld [vmem:[%s3525_s20 + $0x88] sm:$0xff]  ;;  %763 = vst [vmem:[#allocation2 + $0x220] sm:$0xff] %v3386_v48 }
  0x59   : > { %1991 = vmatpush.bf16.msrb.mxu3 %v3112_v41  ;;  %1816 = vmatpush.bf16.msra.mxu1 %v3093_v52  ;;  %764 = vst [vmem:[#allocation2 + $0x228] sm:$0xff] %v3386_v48 }
  0x5a   : > { %3181 = vmatpush.bf16.msra.mxu2 %v3093_v52  ;;  %2080 = vmatpush.bf16.msrb.mxu0 %v3120_v60  ;;  %765 = vst [vmem:[#allocation2 + $0x230] sm:$0xff] %v3386_v48 }
  0x5b   : > { %766 = vst [vmem:[#allocation2 + $0x238] sm:$0xff] %v3386_v48 }
  0x5c   : > { %1817 = vmatmul.bf16.vlgmr.msra.gmra.mxu1 %v1089_v59 }
  0x5d   : > { %1992 = vmatpush.bf16.msrb.mxu3 %v3111_v44 }
  0x5e   : > { %2081 = vmatpush.bf16.msrb.mxu0 %v3119_v61 }
  0x60   : > { %2769 = vmatmul.msk.f32.gmra.mxu0 %vm381_vm0, %v312_v14  ;;  %2786 = vmatmul.msk.f32.gmra.mxu3 %vm381_vm0, %v329_v15  ;;  %v350_v15 = vld [vmem:[%s3525_s20 + $0x8] sm:$0xff] }
  0x61   : > { %1993 = vmatpush.bf16.msrb.mxu3 %v3110_v50 }
  0x62   : > { %2082 = vmatpush.bf16.msrb.mxu0 %v3118_v0 }
  0x65   : > { %1994 = vmatpush.bf16.msrb.mxu3 %v3109_v53 }
  0x66   : > { %2083 = vmatpush.bf16.msrb.mxu0 %v3117_v3 }
  0x68   : > { %2770 = vmatmul.msk.f32.gmra.mxu0 %vm381_vm0, %v313_v16  ;;  %2787 = vmatmul.msk.f32.gmra.mxu3 %vm381_vm0, %v330_v17 }
  0x70   : > { %2771 = vmatmul.msk.f32.gmra.mxu0 %vm381_vm0, %v314_v18  ;;  %2788 = vmatmul.msk.f32.gmra.mxu3 %vm381_vm0, %v331_v19 }
  0x78   : > { %2772 = vmatmul.msk.f32.gmra.mxu0 %vm381_vm0, %v315_v20  ;;  %2789 = vmatmul.msk.f32.gmra.mxu3 %vm381_vm0, %v332_v21 }
  0x80   : > { %2773 = vmatmul.msk.f32.gmra.mxu0 %vm381_vm0, %v316_v22  ;;  %2790 = vmatmul.msk.f32.gmra.mxu3 %vm381_vm0, %v333_v23 }
  0x88   : > { %2774 = vmatmul.msk.f32.gmra.mxu0 %vm381_vm0, %v317_v24  ;;  %2791 = vmatmul.msk.f32.gmra.mxu3 %vm381_vm0, %v334_v25  ;;  %v367_v24 = vld [vmem:[%s3525_s20 + $0x90] sm:$0xff] }
  0x90   : > { %2775 = vmatmul.msk.f32.gmra.mxu0 %vm381_vm0, %v318_v26  ;;  %2792 = vmatmul.msk.f32.gmra.mxu3 %vm381_vm0, %v335_v27  ;;  %v351_v27 = vld [vmem:[%s3525_s20 + $0x10] sm:$0xff] }
  0x98   : > { %2776 = vmatmul.msk.f32.gmra.mxu0 %vm381_vm0, %v319_v32  ;;  %2793 = vmatmul.msk.f32.gmra.mxu3 %vm381_vm0, %v336_v33 }
  0xa0   : > { %2777 = vmatmul.msk.f32.gmra.mxu0 %vm381_vm0, %v320_v38  ;;  %2794 = vmatmul.msk.f32.gmra.mxu3 %vm381_vm0, %v337_v39 }
  0xa8   : > { %2778 = vmatmul.msk.f32.gmra.mxu0 %vm381_vm0, %v321_v46  ;;  %2795 = vmatmul.msk.f32.gmra.mxu3 %vm381_vm0, %v338_v47 }
  0xb0   : > { %2779 = vmatmul.msk.f32.gmra.mxu0 %vm381_vm0, %v322_v55  ;;  %2796 = vmatmul.msk.f32.gmra.mxu3 %vm381_vm0, %v339_v56  ;;  %v369_v55 = vld [vmem:[%s3525_s20 + $0xa0] sm:$0xff] }
  0xb8   : > { %2780 = vmatmul.msk.f32.gmra.mxu0 %vm381_vm0, %v323_v62  ;;  %2797 = vmatmul.msk.f32.gmra.mxu3 %vm381_vm0, %v340_v63 }
  0xc0   : > { %2781 = vmatmul.msk.f32.gmra.mxu0 %vm381_vm0, %v324_v5  ;;  %1995 = vmatmul.bf16.vlgmr.msrb.gmra.mxu3 %v1091_v4  ;;  %v370_v4 = vld [vmem:[%s3525_s20 + $0xa8] sm:$0xff] }
  0xc5   : > { %v495_v8 = vpop.f32.mrf.mxu0 }
  0xc6   : > { %v496_v10 = vadd.f32 %v495_v8, %v349_v6  ;;  %v354_v8 = vld [vmem:[%s3525_s20 + $0x28] sm:$0xff] }
  0xc8   : > { %v595_v12 = vmul.f32 %v3698_v7, %v496_v10  ;;  %2782 = vmatmul.msk.f32.gmra.mxu0 %vm381_vm0, %v325_v9 }
  0xca   : > { %v631_v14 = vadd.f32 %v3708_v11, %v595_v12 }
  0xcb   : > { %v546_v16 = vpop.f32.mrf.mxu3 }
  0xcc   : > { %v663_v17 = vmax.f32 %v631_v14, 0.0  ;;  %v547_v18 = vadd.f32 %v546_v16, %v366_v13 }
  0xcd   : > { %v498_v19 = vpop.f32.mrf.mxu0 }
  0xce   : > { %768 = vst [vmem:[#allocation2 + $0x28] sm:$0xff] %v663_v17  ;;  %v499_v20 = vadd.f32 %v498_v19, %v350_v15  ;;  %v612_v21 = vmul.f32 %v3698_v7, %v547_v18 }
  0xd0   : > { %v596_v22 = vmul.f32 %v3698_v7, %v499_v20  ;;  %v648_v23 = vadd.f32 %v3708_v11, %v612_v21 }
  0xd2   : > { %v632_v25 = vadd.f32 %v3708_v11, %v596_v22  ;;  %v680_v26 = vmax.f32 %v648_v23, 0.0 }
  0xd3   : > { %v549_v28 = vpop.f32.mrf.mxu3 }
  0xd4   : > { %v664_v29 = vmax.f32 %v632_v25, 0.0  ;;  %785 = vst [vmem:[#allocation2 + $0x130] sm:$0xff] %v680_v26  ;;  %v550_v30 = vadd.f32 %v549_v28, %v367_v24  ;;  %v371_v24 = vld [vmem:[%s3525_s20 + $0xb0] sm:$0xff] }
  0xd5   : > { %v501_v31 = vpop.f32.mrf.mxu0  ;;  %v802_v43 = vld [vmem:[#allocation2 + $0x27] sm:$0xff] }
  0xd6   : > { %769 = vst [vmem:[#allocation2 + $0x30] sm:$0xff] %v664_v29  ;;  %v502_v32 = vadd.f32 %v501_v31, %v351_v27  ;;  %v613_v33 = vmul.f32 %v3698_v7, %v550_v30  ;;  %v3730_v34 = vpack.c.bf16 %v664_v29, %v663_v17  ;;  %v355_v27 = vld [vmem:[%s3525_s20 + $0x30] sm:$0xff] }
  0xd8   : > { %v597_v35 = vmul.f32 %v3698_v7, %v502_v32  ;;  %v649_v36 = vadd.f32 %v3708_v11, %v613_v33 }
  0xda   : > { %v633_v38 = vadd.f32 %v3708_v11, %v597_v35  ;;  %v681_v39 = vmax.f32 %v649_v36, 0.0 }
  0xdb   : > { %v552_v41 = vpop.f32.mrf.mxu3 }
  0xdc   : > { %v665_v42 = vmax.f32 %v633_v38, 0.0  ;;  %786 = vst [vmem:[#allocation2 + $0x148] sm:$0xff] %v681_v39  ;;  %v553_v44 = vadd.f32 %v552_v41, %v368_v37  ;;  %v372_v38 = vld [vmem:[%s3525_s20 + $0xb8] sm:$0xff] }
  0xdd   : > { %v504_v45 = vpop.f32.mrf.mxu0  ;;  %v803_v46 = vld [vmem:[#allocation2 + $0x2f] sm:$0xff]  ;;  %v356_v41 = vld [vmem:[%s3525_s20 + $0x38] sm:$0xff] }
  0xde   : > { %v866_v47 = vld [vmem:[#allocation2 + $0x29] sm:$0xff]  ;;  %v867_v48 = vld [vmem:[#allocation2 + $0x31] sm:$0xff]  ;;  %770 = vst [vmem:[#allocation2 + $0x48] sm:$0xff] %v665_v42  ;;  %v505_v49 = vadd.f32 %v504_v45, %v352_v40  ;;  %v1098_v50 = vpack.c.bf16 %v803_v46, %v802_v43  ;;  %v614_v52 = vmul.f32 %v3698_v7, %v553_v44 }
  0xdf   : > { %v1100_v51 = vpack.c.bf16 %v867_v48, %v866_v47 }
  0xe0   : > { %v598_v53 = vmul.f32 %v3698_v7, %v505_v49  ;;  %1822 = vmatmul.bf16.gmra.mxu1 %v1098_v50  ;;  %v650_v54 = vadd.f32 %v3708_v11, %v614_v52  ;;  %2084 = vmatmul.bf16.vlgmr.msrb.gmra.mxu0 %v1098_v50 }
  0xe1   : > { %2000 = vmatmul.bf16.gmra.mxu3 %v1100_v51 }
  0xe2   : > { %v634_v56 = vadd.f32 %v3708_v11, %v598_v53  ;;  %v682_v57 = vmax.f32 %v650_v54, 0.0 }
  0xe3   : > { %v555_v59 = vpop.f32.mrf.mxu3 }
  0xe4   : > { %v666_v60 = vmax.f32 %v634_v56, 0.0  ;;  %787 = vst [vmem:[#allocation2 + $0x150] sm:$0xff] %v682_v57  ;;  %v556_v61 = vadd.f32 %v555_v59, %v369_v55  ;;  %v373_v56 = vld [vmem:[%s3525_s20 + $0xc0] sm:$0xff] }
  0xe5   : > { %v507_v62 = vpop.f32.mrf.mxu0  ;;  %v804_v12 = vld [vmem:[#allocation2 + $0x47] sm:$0xff] }
  0xe6   : > { %771 = vst [vmem:[#allocation2 + $0x50] sm:$0xff] %v666_v60  ;;  %v508_v63 = vadd.f32 %v507_v62, %v353_v58  ;;  %v615_v0 = vmul.f32 %v3698_v7, %v556_v61  ;;  %v3744_v1 = vpack.c.bf16 %v666_v60, %v665_v42  ;;  %v357_v59 = vld [vmem:[%s3525_s20 + $0x40] sm:$0xff] }
  0xe8   : > { %v599_v2 = vmul.f32 %v3698_v7, %v508_v63  ;;  %v651_v3 = vadd.f32 %v3708_v11, %v615_v0 }
  0xea   : > { %v635_v5 = vadd.f32 %v3708_v11, %v599_v2  ;;  %v683_v6 = vmax.f32 %v651_v3, 0.0 }
  0xeb   : > { %v558_v9 = vpop.f32.mrf.mxu3 }
  0xec   : > { %v667_v10 = vmax.f32 %v635_v5, 0.0  ;;  %788 = vst [vmem:[#allocation2 + $0x168] sm:$0xff] %v683_v6  ;;  %v559_v13 = vadd.f32 %v558_v9, %v370_v4  ;;  %v374_v6 = vld [vmem:[%s3525_s20 + $0xc8] sm:$0xff] }
  0xed   : > { %v510_v14 = vpop.f32.mrf.mxu0  ;;  %v805_v15 = vld [vmem:[#allocation2 + $0x4f] sm:$0xff] }
  0xee   : > { %v868_v16 = vld [vmem:[#allocation2 + $0x49] sm:$0xff]  ;;  %v869_v17 = vld [vmem:[#allocation2 + $0x51] sm:$0xff]  ;;  %772 = vst [vmem:[#allocation2 + $0x68] sm:$0xff] %v667_v10  ;;  %v511_v18 = vadd.f32 %v510_v14, %v354_v8  ;;  %v1107_v19 = vpack.c.bf16 %v805_v15, %v804_v12  ;;  %v616_v21 = vmul.f32 %v3698_v7, %v559_v13 }
  0xef   : > { %v1109_v20 = vpack.c.bf16 %v869_v17, %v868_v16 }
  0xf0   : > { %v600_v22 = vmul.f32 %v3698_v7, %v511_v18  ;;  %1827 = vmatmul.bf16.gmra.mxu1 %v1107_v19  ;;  %v652_v23 = vadd.f32 %v3708_v11, %v616_v21  ;;  %2089 = vmatmul.bf16.gmra.mxu0 %v1107_v19 }
  0xf1   : > { %2005 = vmatmul.bf16.gmra.mxu3 %v1109_v20 }
  0xf2   : > { %v636_v25 = vadd.f32 %v3708_v11, %v600_v22  ;;  %v684_v26 = vmax.f32 %v652_v23, 0.0 }
  0xf3   : > { %v561_v28 = vpop.f32.mrf.mxu3 }
  0xf4   : > { %v668_v29 = vmax.f32 %v636_v25, 0.0  ;;  %789 = vst [vmem:[#allocation2 + $0x170] sm:$0xff] %v684_v26  ;;  %v562_v30 = vadd.f32 %v561_v28, %v371_v24  ;;  %v3132_v26 = vld [vmem:[#allocation6 + $0x138] sm:$0xff] }
  0xf5   : > { %v513_v31 = vpop.f32.mrf.mxu0  ;;  %v806_v44 = vld [vmem:[#allocation2 + $0x67] sm:$0xff]  ;;  %2165 = vmatpush.bf16.msrb.mxu1 %v3132_v26 }
  0xf6   : > { %773 = vst [vmem:[#allocation2 + $0x70] sm:$0xff] %v668_v29  ;;  %v514_v32 = vadd.f32 %v513_v31, %v355_v27  ;;  %v617_v33 = vmul.f32 %v3698_v7, %v562_v30  ;;  %v3758_v35 = vpack.c.bf16 %v668_v29, %v667_v10  ;;  %v358_v10 = vld [vmem:[%s3525_s20 + $0x48] sm:$0xff]  ;;  %v375_v27 = vld [vmem:[%s3525_s20 + $0xd0] sm:$0xff] }
  0xf7   : > { %v359_v30 = vld [vmem:[%s3525_s20 + $0x50] sm:$0xff] }
  0xf8   : > { %v601_v36 = vmul.f32 %v3698_v7, %v514_v32  ;;  %v653_v37 = vadd.f32 %v3708_v11, %v617_v33 }
  0xfa   : > { %v637_v39 = vadd.f32 %v3708_v11, %v601_v36  ;;  %v685_v40 = vmax.f32 %v653_v37, 0.0  ;;  %v3131_v36 = vld [vmem:[#allocation6 + $0x130] sm:$0xff] }
  0xfb   : > { %v564_v42 = vpop.f32.mrf.mxu3  ;;  %2166 = vmatpush.bf16.msrb.mxu1 %v3131_v36 }
  0xfc   : > { %v669_v43 = vmax.f32 %v637_v39, 0.0  ;;  %790 = vst [vmem:[#allocation2 + $0x188] sm:$0xff] %v685_v40  ;;  %v565_v45 = vadd.f32 %v564_v42, %v372_v38 }
  0xfd   : > { %v516_v46 = vpop.f32.mrf.mxu0  ;;  %v807_v47 = vld [vmem:[#allocation2 + $0x6f] sm:$0xff] }
  0xfe   : > { %v870_v48 = vld [vmem:[#allocation2 + $0x69] sm:$0xff]  ;;  %v871_v49 = vld [vmem:[#allocation2 + $0x71] sm:$0xff]  ;;  %774 = vst [vmem:[#allocation2 + $0x88] sm:$0xff] %v669_v43  ;;  %v517_v50 = vadd.f32 %v516_v46, %v356_v41  ;;  %v1116_v51 = vpack.c.bf16 %v807_v47, %v806_v44  ;;  %v618_v53 = vmul.f32 %v3698_v7, %v565_v45 }
  0xff   : > { %v1118_v52 = vpack.c.bf16 %v871_v49, %v870_v48  ;;  %v376_v44 = vld [vmem:[%s3525_s20 + $0xd8] sm:$0xff] }
 0x100   : > { %v602_v54 = vmul.f32 %v3698_v7, %v517_v50  ;;  %1832 = vmatmul.bf16.gmra.mxu1 %v1116_v51  ;;  %v654_v55 = vadd.f32 %v3708_v11, %v618_v53  ;;  %2094 = vmatmul.bf16.gmra.mxu0 %v1116_v51  ;;  %v360_v47 = vld [vmem:[%s3525_s20 + $0x58] sm:$0xff] }
 0x101   : > { %2010 = vmatmul.bf16.gmra.mxu3 %v1118_v52  ;;  %v3129_v52 = vld [vmem:[#allocation6 + $0x120] sm:$0xff] }
 0x102   : > { %v638_v57 = vadd.f32 %v3708_v11, %v602_v54  ;;  %v686_v58 = vmax.f32 %v654_v55, 0.0 }
 0x103   : > { %v567_v60 = vpop.f32.mrf.mxu3 }
 0x104   : > { %v670_v61 = vmax.f32 %v638_v57, 0.0  ;;  %791 = vst [vmem:[#allocation2 + $0x190] sm:$0xff] %v686_v58  ;;  %v568_v62 = vadd.f32 %v567_v60, %v373_v56 }
 0x105   : > { %v519_v63 = vpop.f32.mrf.mxu0  ;;  %v808_v14 = vld [vmem:[#allocation2 + $0x87] sm:$0xff] }
 0x106   : > { %775 = vst [vmem:[#allocation2 + $0x90] sm:$0xff] %v670_v61  ;;  %v520_v0 = vadd.f32 %v519_v63, %v357_v59  ;;  %v619_v2 = vmul.f32 %v3698_v7, %v568_v62  ;;  %v3772_v3 = vpack.c.bf16 %v670_v61, %v669_v43  ;;  %v3130_v43 = vld [vmem:[#allocation6 + $0x128] sm:$0xff]  ;;  %v3128_v63 = vld [vmem:[#allocation6 + $0x118] sm:$0xff] }
 0x107   : > { %2167 = vmatpush.bf16.msrb.mxu1 %v3130_v43 }
 0x108   : > { %v603_v4 = vmul.f32 %v3698_v7, %v520_v0  ;;  %v655_v5 = vadd.f32 %v3708_v11, %v619_v2  ;;  %v377_v0 = vld [vmem:[%s3525_s20 + $0xe0] sm:$0xff] }
 0x10a   : > { %v639_v8 = vadd.f32 %v3708_v11, %v603_v4  ;;  %v687_v9 = vmax.f32 %v655_v5, 0.0  ;;  %v361_v5 = vld [vmem:[%s3525_s20 + $0x60] sm:$0xff] }
 0x10b   : > { %v570_v12 = vpop.f32.mrf.mxu3  ;;  %2168 = vmatpush.bf16.msrb.mxu1 %v3129_v52 }
 0x10c   : > { %v671_v13 = vmax.f32 %v639_v8, 0.0  ;;  %792 = vst [vmem:[#allocation2 + $0x1a8] sm:$0xff] %v687_v9  ;;  %v571_v15 = vadd.f32 %v570_v12, %v374_v6 }
 0x10d   : > { %v522_v16 = vpop.f32.mrf.mxu0  ;;  %v809_v17 = vld [vmem:[#allocation2 + $0x8f] sm:$0xff] }
 0x10e   : > { %v872_v18 = vld [vmem:[#allocation2 + $0x89] sm:$0xff]  ;;  %v873_v19 = vld [vmem:[#allocation2 + $0x91] sm:$0xff]  ;;  %776 = vst [vmem:[#allocation2 + $0xa8] sm:$0xff] %v671_v13  ;;  %v523_v20 = vadd.f32 %v522_v16, %v358_v10  ;;  %v1125_v21 = vpack.c.bf16 %v809_v17, %v808_v14  ;;  %v620_v23 = vmul.f32 %v3698_v7, %v571_v15 }
 0x10f   : > { %v1127_v22 = vpack.c.bf16 %v873_v19, %v872_v18  ;;  %2169 = vmatpush.bf16.msrb.mxu1 %v3128_v63  ;;  %v3127_v10 = vld [vmem:[#allocation6 + $0x110] sm:$0xff]  ;;  %v3126_v16 = vld [vmem:[#allocation6 + $0x108] sm:$0xff] }
 0x110   : > { %v604_v24 = vmul.f32 %v3698_v7, %v523_v20  ;;  %1837 = vmatmul.bf16.gmra.mxu1 %v1125_v21  ;;  %v656_v25 = vadd.f32 %v3708_v11, %v620_v23  ;;  %2099 = vmatmul.bf16.gmra.mxu0 %v1125_v21  ;;  %v378_v19 = vld [vmem:[%s3525_s20 + $0xe8] sm:$0xff] }
 0x111   : > { %2015 = vmatmul.bf16.gmra.mxu3 %v1127_v22  ;;  %v362_v22 = vld [vmem:[%s3525_s20 + $0x68] sm:$0xff] }
 0x112   : > { %v640_v28 = vadd.f32 %v3708_v11, %v604_v24  ;;  %v688_v29 = vmax.f32 %v656_v25, 0.0 }
 0x113   : > { %v573_v31 = vpop.f32.mrf.mxu3  ;;  %2170 = vmatpush.bf16.msrb.mxu1 %v3127_v10 }
 0x114   : > { %v672_v32 = vmax.f32 %v640_v28, 0.0  ;;  %793 = vst [vmem:[#allocation2 + $0x1b0] sm:$0xff] %v688_v29  ;;  %v574_v33 = vadd.f32 %v573_v31, %v375_v27  ;;  %v3125_v27 = vld [vmem:[#allocation6 + $0x100] sm:$0xff] }
 0x115   : > { %v525_v37 = vpop.f32.mrf.mxu0  ;;  %v810_v50 = vld [vmem:[#allocation2 + $0xa7] sm:$0xff] }
 0x116   : > { %777 = vst [vmem:[#allocation2 + $0xb0] sm:$0xff] %v672_v32  ;;  %v526_v38 = vadd.f32 %v525_v37, %v359_v30  ;;  %v621_v39 = vmul.f32 %v3698_v7, %v574_v33  ;;  %v3786_v40 = vpack.c.bf16 %v672_v32, %v671_v13 }
 0x117   : > { %2171 = vmatpush.bf16.msrb.mxu1 %v3126_v16 }
 0x118   : > { %v605_v41 = vmul.f32 %v3698_v7, %v526_v38  ;;  %v657_v42 = vadd.f32 %v3708_v11, %v621_v39 }
 0x11a   : > { %v641_v45 = vadd.f32 %v3708_v11, %v605_v41  ;;  %v689_v46 = vmax.f32 %v657_v42, 0.0  ;;  %v3108_v41 = vld [vmem:[#allocation6 + $0x78] sm:$0xff]  ;;  %v379_v42 = vld [vmem:[%s3525_s20 + $0xf0] sm:$0xff] }
 0x11b   : > { %v576_v48 = vpop.f32.mrf.mxu3  ;;  %2172 = vmatpush.bf16.msrb.mxu1 %v3125_v27  ;;  %1898 = vmatpush.bf16.msrb.mxu2 %v3108_v41 }
 0x11c   : > { %v673_v49 = vmax.f32 %v641_v45, 0.0  ;;  %794 = vst [vmem:[#allocation2 + $0x1c8] sm:$0xff] %v689_v46  ;;  %v577_v51 = vadd.f32 %v576_v48, %v376_v44  ;;  %v363_v45 = vld [vmem:[%s3525_s20 + $0x70] sm:$0xff] }
 0x11d   : > { %v528_v53 = vpop.f32.mrf.mxu0  ;;  %v811_v54 = vld [vmem:[#allocation2 + $0xaf] sm:$0xff] }
 0x11e   : > { %v874_v55 = vld [vmem:[#allocation2 + $0xa9] sm:$0xff]  ;;  %v875_v56 = vld [vmem:[#allocation2 + $0xb1] sm:$0xff]  ;;  %778 = vst [vmem:[#allocation2 + $0xc8] sm:$0xff] %v673_v49  ;;  %v529_v57 = vadd.f32 %v528_v53, %v360_v47  ;;  %v1134_v58 = vpack.c.bf16 %v811_v54, %v810_v50  ;;  %v622_v60 = vmul.f32 %v3698_v7, %v577_v51 }
 0x11f   : > { %v1136_v59 = vpack.c.bf16 %v875_v56, %v874_v55  ;;  %v380_v55 = vld [vmem:[%s3525_s20 + $0xf8] sm:$0xff] }
 0x120   : > { %v606_v61 = vmul.f32 %v3698_v7, %v529_v57  ;;  %1842 = vmatmul.bf16.gmra.mxu1 %v1134_v58  ;;  %v658_v62 = vadd.f32 %v3708_v11, %v622_v60  ;;  %2104 = vmatmul.bf16.gmra.mxu0 %v1134_v58  ;;  %v364_v58 = vld [vmem:[%s3525_s20 + $0x78] sm:$0xff] }
 0x121   : > { %2020 = vmatmul.bf16.gmra.mxu3 %v1136_v59 }
 0x122   : > { %v642_v2 = vadd.f32 %v3708_v11, %v606_v61  ;;  %v690_v4 = vmax.f32 %v658_v62, 0.0 }
 0x123   : > { %v579_v6 = vpop.f32.mrf.mxu3 }
 0x124   : > { %v674_v8 = vmax.f32 %v642_v2, 0.0  ;;  %795 = vst [vmem:[#allocation2 + $0x1d0] sm:$0xff] %v690_v4  ;;  %v580_v9 = vadd.f32 %v579_v6, %v377_v0 }
 0x125   : > { %v531_v12 = vpop.f32.mrf.mxu0  ;;  %v812_v25 = vld [vmem:[#allocation2 + $0xc7] sm:$0xff] }
 0x126   : > { %779 = vst [vmem:[#allocation2 + $0xd0] sm:$0xff] %v674_v8  ;;  %v532_v13 = vadd.f32 %v531_v12, %v361_v5  ;;  %v623_v14 = vmul.f32 %v3698_v7, %v580_v9  ;;  %v3800_v15 = vpack.c.bf16 %v674_v8, %v673_v49 }
 0x128   : > { %v607_v17 = vmul.f32 %v3698_v7, %v532_v13  ;;  %v659_v18 = vadd.f32 %v3708_v11, %v623_v14  ;;  %v3107_v13 = vld [vmem:[#allocation6 + $0x70] sm:$0xff] }
 0x129   : > { %1899 = vmatpush.bf16.msrb.mxu2 %v3107_v13 }
 0x12a   : > { %v643_v20 = vadd.f32 %v3708_v11, %v607_v17  ;;  %v691_v21 = vmax.f32 %v659_v18, 0.0  ;;  %v365_v17 = vld [vmem:[%s3525_s20 + $0x80] sm:$0xff]  ;;  %s4384_s20 = scalar_lea.vmem [#allocation8], %s2761_s14  ;;  %s3165_s14 = sshll.u32 %s3445_s25, 8 }
 0x12b   : > { %v582_v23 = vpop.f32.mrf.mxu3  ;;  %s2654_s12 = scalar_lea.hbm %s4687_s6, %s3165_s14  ;;  %s2655_s13 = sshll.u32 %s4384_s20, 4  ;;  %s2656_s13 = int_to_ptr.vmem [resolvable:$true] %s2655_s13 }
 0x12c   : > { %v675_v24 = vmax.f32 %v643_v20, 0.0  ;;  %796 = vst [vmem:[#allocation2 + $0x1e8] sm:$0xff] %v691_v21  ;;  %v583_v26 = vadd.f32 %v582_v23, %v378_v19  ;;  %v3852_v23 = vpop.f32.mrf.mxu1  ;;  %s2657_s27 = sshll.u32 %s2654_s12, 4  ;;  %s2643_s25 = scalar_lea.sflag [#allocation5], %s3519_s19  ;;  %s2658_s27 = int_to_ptr.hbm [resolvable:$true] %s2657_s27 }
 0x12d   : > { %v534_v28 = vpop.f32.mrf.mxu0  ;;  %v813_v29 = vld [vmem:[#allocation2 + $0xcf] sm:$0xff]  ;;  %s3323_s26 = sshra.s32 %s2658_s27, 4  ;;  %s3324_s26 = int_to_ptr.hbm [resolvable:$true] %s3323_s26 }
 0x12e   : > { %v876_v30 = vld [vmem:[#allocation2 + $0xc9] sm:$0xff]  ;;  %v877_v31 = vld [vmem:[#allocation2 + $0xd1] sm:$0xff]  ;;  %780 = vst [vmem:[#allocation2 + $0xe8] sm:$0xff] %v675_v24  ;;  %v535_v32 = vadd.f32 %v534_v28, %v362_v22  ;;  %v3807_v33 = vpack.c.bf16 %v813_v29, %v812_v25  ;;  %v624_v37 = vmul.f32 %v3698_v7, %v583_v26  ;;  %s3325_s29 = scalar_lea.hbm %s3324_s26, 256  ;;  %p3330_p9 = scmp.lt.s32.totalorder %s3324_s26, %s4687_s6 }
 0x12f   : > { %v1145_v36 = vpack.c.bf16 %v877_v31, %v876_v30  ;;  %p3326_p1 = scmp.ne.s32.totalorder %s3324_s26, %s3325_s29  ;;  %p3331_p2 = scmp.lt.s32.totalorder %s3329_s9, %s3325_s29 }
 0x130   : > { %v608_v38 = vmul.f32 %v3698_v7, %v535_v32  ;;  %1847 = vmatmul.bf16.gmra.mxu1 %v3807_v33  ;;  %v3813_v39 = vadd.f32 %v3708_v11, %v624_v37  ;;  %2109 = vmatmul.bf16.gmra.mxu0 %v3807_v33 }
 0x131   : > { %2025 = vmatmul.bf16.gmra.mxu3 %v1145_v36  ;;  %v883_v36 = vld [vmem:[#allocation2 + $0x131] sm:$0xff]  ;;  %p3327_p4 = pnand %p3326_p1, %p3491_p7  ;;  %p3332_p10 = por %p3331_p2, %p3330_p9 }
 0x132   : > { %v644_v43 = vadd.f32 %v3708_v11, %v608_v38  ;;  %v4690_v44 = vmax.f32 %v3813_v39, 0.0 }
 0x133   : > { %v585_v46 = vpop.f32.mrf.mxu3  ;;  %p3328_p11 = pneg %p3327_p4 }
 0x134   : > { %v676_v47 = vmax.f32 %v644_v43, 0.0  ;;  %797 = vst [vmem:[#allocation2 + $0x1f0] sm:$0xff] %v4690_v44  ;;  %v586_v48 = vadd.f32 %v585_v46, %v379_v42  ;;  %v3149_v44 = vld [vmem:[#allocation6 + $0x1c0] sm:$0xff] }
 0x135   : > { %v537_v49 = vpop.f32.mrf.mxu0  ;;  %v814_v61 = vld [vmem:[#allocation2 + $0xe7] sm:$0xff]  ;;  %p3333_p12 = pnand %p3332_p10, %p3328_p11 }
 0x136   : > { %781 = vst [vmem:[#allocation2 + $0xf0] sm:$0xff] %v676_v47  ;;  %v538_v50 = vadd.f32 %v537_v49, %v363_v45  ;;  %v625_v51 = vmul.f32 %v3698_v7, %v586_v48  ;;  %v3823_v52 = vpack.c.bf16 %v676_v47, %v675_v24 }
 0x138   : > { %v609_v53 = vmul.f32 %v3698_v7, %v538_v50  ;;  %v3827_v54 = vadd.f32 %v3708_v11, %v625_v51  ;;  %v820_v51 = vld [vmem:[#allocation2 + $0x147] sm:$0xff] }
 0x13a   : > { %v645_v56 = vadd.f32 %v3708_v11, %v609_v53  ;;  %v4689_v57 = vmax.f32 %v3827_v54, 0.0 }
 0x13b   : > { %v588_v59 = vpop.f32.mrf.mxu3 }
 0x13c   : > { %v677_v60 = vmax.f32 %v645_v56, 0.0  ;;  %798 = vst [vmem:[#allocation2 + $0x208] sm:$0xff] %v4689_v57  ;;  %v589_v62 = vadd.f32 %v588_v59, %v380_v55  ;;  %v821_v55 = vld [vmem:[#allocation2 + $0x14f] sm:$0xff] }
 0x13d   : > { %v540_v63 = vpop.f32.mrf.mxu0  ;;  %v815_v0 = vld [vmem:[#allocation2 + $0xef] sm:$0xff] }
 0x13e   : > { %v878_v2 = vld [vmem:[#allocation2 + $0xe9] sm:$0xff]  ;;  %v879_v4 = vld [vmem:[#allocation2 + $0xf1] sm:$0xff]  ;;  %782 = vst [vmem:[#allocation2 + $0x108] sm:$0xff] %v677_v60  ;;  %v541_v5 = vadd.f32 %v540_v63, %v364_v58  ;;  %v3835_v6 = vpack.c.bf16 %v815_v0, %v814_v61  ;;  %v626_v9 = vmul.f32 %v3698_v7, %v589_v62  ;;  %v3892_v61 = vpack.c.bf16 %v821_v55, %v820_v51 }
 0x13f   : > { %v1154_v8 = vpack.c.bf16 %v879_v4, %v878_v2  ;;  %v884_v56 = vld [vmem:[#allocation2 + $0x149] sm:$0xff]  ;;  %v885_v58 = vld [vmem:[#allocation2 + $0x151] sm:$0xff] }
 0x140   : > { %v610_v10 = vmul.f32 %v3698_v7, %v541_v5  ;;  %1852 = vmatmul.bf16.gmra.mxu1 %v3835_v6  ;;  %v3841_v12 = vadd.f32 %v3708_v11, %v626_v9  ;;  %2114 = vmatmul.bf16.gmra.mxu0 %v3835_v6  ;;  %v3104_v62 = vld [vmem:[#allocation6 + $0x58] sm:$0xff]  ;;  %v822_v4 = vld [vmem:[#allocation2 + $0x167] sm:$0xff] }
 0x141   : > { %2030 = vmatmul.bf16.gmra.mxu3 %v1154_v8  ;;  %v823_v8 = vld [vmem:[#allocation2 + $0x16f] sm:$0xff] }
 0x142   : > { %v646_v14 = vadd.f32 %v3708_v11, %v610_v10  ;;  %v4688_v16 = vmax.f32 %v3841_v12, 0.0  ;;  %v886_v9 = vld [vmem:[#allocation2 + $0x169] sm:$0xff]  ;;  %v887_v10 = vld [vmem:[#allocation2 + $0x171] sm:$0xff] }
 0x143   : > { %v3862_v32 = vpop.f32.mrf.mxu3 }
 0x144   : > { %v678_v18 = vmax.f32 %v646_v14, 0.0  ;;  %799 = vst [vmem:[#allocation2 + $0x210] sm:$0xff] %v4688_v16  ;;  %v3151_v16 = vld [vmem:[#allocation6 + $0x1d0] sm:$0xff] }
 0x145   : > { %v543_v19 = vpop.f32.mrf.mxu0  ;;  %v816_v26 = vld [vmem:[#allocation2 + $0x107] sm:$0xff] }
 0x146   : > { %783 = vst [vmem:[#allocation2 + $0x110] sm:$0xff] %v678_v18  ;;  %v544_v20 = vadd.f32 %v543_v19, %v365_v17  ;;  %v3849_v21 = vpack.c.bf16 %v678_v18, %v677_v60  ;;  %v3909_v17 = vpack.c.bf16 %v823_v8, %v822_v4  ;;  %v3103_v18 = vld [vmem:[#allocation6 + $0x50] sm:$0xff] }
 0x147   : > { %v890_v4 = vld [vmem:[#allocation2 + $0x1a9] sm:$0xff]  ;;  %v891_v8 = vld [vmem:[#allocation2 + $0x1b1] sm:$0xff] }
 0x148   : > { %v611_v22 = vmul.f32 %v3698_v7, %v544_v20  ;;  %v3106_v7 = vld [vmem:[#allocation6 + $0x68] sm:$0xff] }
 0x149   : > { %1900 = vmatpush.bf16.msrb.mxu2 %v3106_v7 }
 0x14a   : > { %v3855_v24 = vadd.f32 %v3708_v11, %v611_v22  ;;  %v3867_v11 = vpop.f32.mrf.mxu1 }
 0x14b   : > { %v3869_v37 = vpop.f32.mrf.mxu3 }
 0x14c   : > { %v4691_v25 = vmax.f32 %v3855_v24, 0.0 }
 0x14d   : > { %v817_v27 = vld [vmem:[#allocation2 + $0x10f] sm:$0xff] }
 0x14e   : > { %v880_v28 = vld [vmem:[#allocation2 + $0x109] sm:$0xff]  ;;  %v881_v29 = vld [vmem:[#allocation2 + $0x111] sm:$0xff]  ;;  %784 = vst [vmem:[#allocation2 + $0x128] sm:$0xff] %v4691_v25  ;;  %v3860_v30 = vpack.c.bf16 %v817_v27, %v816_v26 }
 0x14f   : > { %v1163_v31 = vpack.c.bf16 %v881_v29, %v880_v28  ;;  %v824_v26 = vld [vmem:[#allocation2 + $0x187] sm:$0xff]  ;;  %v825_v28 = vld [vmem:[#allocation2 + $0x18f] sm:$0xff] }
 0x150   : > { %1857 = vmatmul.bf16.vlgmr.msra.gmra.mxu2 %v3860_v30  ;;  %2119 = vmatmul.bf16.gmra.mxu0 %v3860_v30  ;;  %v888_v29 = vld [vmem:[#allocation2 + $0x189] sm:$0xff] }
 0x151   : > { %2035 = vmatmul.bf16.gmra.mxu3 %v1163_v31  ;;  %2173 = vmatmul.bf16.vlgmr.msrb.gmra.mxu1 %v3730_v34  ;;  %v3105_v34 = vld [vmem:[#allocation6 + $0x60] sm:$0xff]  ;;  %v889_v31 = vld [vmem:[#allocation2 + $0x191] sm:$0xff] }
 0x152   : > { %1901 = vmatpush.bf16.msrb.mxu2 %v3105_v34  ;;  %v3147_v34 = vld [vmem:[#allocation6 + $0x1b0] sm:$0xff] }
 0x155   : > { %v818_v38 = vld [vmem:[#allocation2 + $0x127] sm:$0xff]  ;;  %v819_v41 = vld [vmem:[#allocation2 + $0x12f] sm:$0xff] }
 0x156   : > { %v882_v42 = vld [vmem:[#allocation2 + $0x129] sm:$0xff]  ;;  %v3871_v43 = vpack.c.bf16 %v819_v41, %v818_v38  ;;  %1902 = vmatpush.bf16.msrb.mxu2 %v3104_v62  ;;  %v3926_v38 = vpack.c.bf16 %v825_v28, %v824_v26  ;;  %v3101_v26 = vld [vmem:[#allocation6 + $0x40] sm:$0xff]  ;;  %v3144_v28 = vld [vmem:[#allocation6 + $0x198] sm:$0xff] }
 0x157   : > { %v1172_v45 = vpack.c.bf16 %v883_v36, %v882_v42  ;;  %v3102_v41 = vld [vmem:[#allocation6 + $0x48] sm:$0xff]  ;;  %v3148_v42 = vld [vmem:[#allocation6 + $0x1b8] sm:$0xff] }
 0x158   : > { %2343 = vmatpush.bf16.msra.mxu3 %v3148_v42  ;;  %v827_v62 = vld [vmem:[#allocation2 + $0x1af] sm:$0xff] }
 0x15a   : > { %1903 = vmatpush.bf16.msrb.mxu2 %v3103_v18 }
 0x15c   : > { %2344 = vmatpush.bf16.msra.mxu3 %v3147_v34  ;;  %v3142_v34 = vld [vmem:[#allocation6 + $0x188] sm:$0xff] }
 0x15d   : > { %v3873_v46 = vpop.f32.mrf.mxu1  ;;  %v3875_v47 = vpop.f32.mrf.mxu0 }
 0x15e   : > { %1904 = vmatpush.bf16.msrb.mxu2 %v3102_v41  ;;  %v3155_v41 = vld [vmem:[#allocation6 + $0x1f0] sm:$0xff] }
 0x160   : > { %1862 = vmatmul.bf16.gmra.mxu2 %v3871_v43  ;;  %2124 = vmatmul.bf16.gmra.mxu0 %v3871_v43 }
 0x161   : > { %2040 = vmatmul.bf16.gmra.mxu3 %v1172_v45  ;;  %2178 = vmatmul.bf16.gmra.mxu1 %v3744_v1  ;;  %v1181_v1 = vpack.c.bf16 %v885_v58, %v884_v56  ;;  %v3146_v56 = vld [vmem:[#allocation6 + $0x1a8] sm:$0xff] }
 0x162   : > { %v826_v58 = vld [vmem:[#allocation2 + $0x1a7] sm:$0xff]  ;;  %2345 = vmatpush.bf16.msra.mxu3 %v3146_v56  ;;  %1905 = vmatpush.bf16.msrb.mxu2 %v3101_v26 }
 0x163   : > { %v3154_v56 = vld [vmem:[#allocation6 + $0x1e8] sm:$0xff]  ;;  %v3153_v26 = vld [vmem:[#allocation6 + $0x1e0] sm:$0xff] }
 0x164   : > { %v3880_v48 = vpop.f32.mrf.mxu3 }
 0x165   : > { %v3882_v49 = vpop.f32.mrf.mxu1  ;;  %v3884_v50 = vpop.f32.mrf.mxu0 }
 0x16c   : > { %v3886_v53 = vpop.f32.mrf.mxu3 }
 0x16d   : > { %v3888_v59 = vpop.f32.mrf.mxu1  ;;  %v3890_v60 = vpop.f32.mrf.mxu0 }
 0x170   : > { %1867 = vmatmul.bf16.gmra.mxu2 %v3892_v61  ;;  %2129 = vmatmul.bf16.gmra.mxu0 %v3892_v61 }
 0x171   : > { %2045 = vmatmul.bf16.gmra.mxu3 %v1181_v1  ;;  %2183 = vmatmul.bf16.gmra.mxu1 %v3758_v35  ;;  %v1190_v35 = vpack.c.bf16 %v887_v10, %v886_v9  ;;  %v3145_v9 = vld [vmem:[#allocation6 + $0x1a0] sm:$0xff]  ;;  %v3941_v10 = vpack.c.bf16 %v827_v62, %v826_v58 }
 0x172   : > { %2346 = vmatpush.bf16.msra.mxu3 %v3145_v9  ;;  %v828_v62 = vld [vmem:[#allocation2 + $0x1c7] sm:$0xff] }
 0x174   : > { %v3897_v63 = vpop.f32.mrf.mxu3 }
 0x175   : > { %v3899_v0 = vpop.f32.mrf.mxu1  ;;  %v3901_v2 = vpop.f32.mrf.mxu0 }
 0x176   : > { %2347 = vmatpush.bf16.msra.mxu3 %v3144_v28 }
 0x17c   : > { %v3903_v5 = vpop.f32.mrf.mxu3 }
 0x17d   : > { %v3905_v13 = vpop.f32.mrf.mxu1  ;;  %v3907_v14 = vpop.f32.mrf.mxu0 }
 0x180   : > { %1872 = vmatmul.bf16.gmra.mxu2 %v3909_v17  ;;  %2134 = vmatmul.bf16.gmra.mxu0 %v3909_v17 }
 0x181   : > { %2050 = vmatmul.bf16.gmra.mxu3 %v1190_v35  ;;  %2188 = vmatmul.bf16.gmra.mxu1 %v3772_v3  ;;  %v1199_v3 = vpack.c.bf16 %v889_v31, %v888_v29  ;;  %v1208_v35 = vpack.c.bf16 %v891_v8, %v890_v4  ;;  %v3156_v29 = vld [vmem:[#allocation6 + $0x1f8] sm:$0xff]  ;;  %v829_v4 = vld [vmem:[#allocation2 + $0x1cf] sm:$0xff] }
 0x182   : > { %2432 = vmatpush.bf16.msra.mxu0 %v3156_v29  ;;  %v892_v8 = vld [vmem:[#allocation2 + $0x1c9] sm:$0xff]  ;;  %v3958_v29 = vpack.c.bf16 %v829_v4, %v828_v62 }
 0x183   : > { %v3150_v4 = vld [vmem:[#allocation6 + $0x1c8] sm:$0xff] }
 0x184   : > { %v3914_v19 = vpop.f32.mrf.mxu3 }
 0x185   : > { %4700 = vst [vmem:[#allocation12_spill] sm:$0xff] %v3914_v19  ;;  %v3916_v20 = vpop.f32.mrf.mxu1  ;;  %v3918_v22 = vpop.f32.mrf.mxu0 }
 0x186   : > { %4701 = vst [vmem:[#allocation13_spill] sm:$0xff] %v3916_v20  ;;  %2433 = vmatpush.bf16.msra.mxu0 %v3155_v41  ;;  %v3152_v41 = vld [vmem:[#allocation6 + $0x1d8] sm:$0xff]  ;;  %v1073_v20 = vld [vmem:[#allocation2 + $0x149] sm:$0xff] }
 0x18a   : > { %2434 = vmatpush.bf16.msra.mxu0 %v3154_v56 }
 0x18c   : > { %v3920_v27 = vpop.f32.mrf.mxu3 }
 0x18d   : > { %4702 = vst [vmem:[#allocation14_spill] sm:$0xff] %v3920_v27  ;;  %v3922_v7 = vpop.f32.mrf.mxu1  ;;  %v3924_v36 = vpop.f32.mrf.mxu0 }
 0x18e   : > { %4703 = vst [vmem:[#allocation15_spill] sm:$0xff] %v3922_v7  ;;  %2435 = vmatpush.bf16.msra.mxu0 %v3153_v26  ;;  %v895_v26 = vld [vmem:[#allocation2 + $0x1f1] sm:$0xff] }
 0x18f   : > { %4704 = vst [vmem:[#allocation16_spill] sm:$0xff] %v3924_v36 }
 0x190   : > { %1877 = vmatmul.bf16.gmra.mxu2 %v3926_v38  ;;  %2139 = vmatmul.bf16.gmra.mxu0 %v3926_v38 }
 0x191   : > { %2055 = vmatmul.bf16.gmra.mxu3 %v1199_v3  ;;  %2193 = vmatmul.bf16.gmra.mxu1 %v3786_v40  ;;  %v3143_v3 = vld [vmem:[#allocation6 + $0x190] sm:$0xff] }
 0x192   : > { %2348 = vmatpush.bf16.msra.mxu3 %v3143_v3  ;;  %2436 = vmatpush.bf16.msra.mxu0 %v3152_v41 }
 0x194   : > { %v3931_v45 = vpop.f32.mrf.mxu3 }
 0x195   : > { %4705 = vst [vmem:[#allocation17_spill] sm:$0xff] %v3931_v45  ;;  %v3933_v51 = vpop.f32.mrf.mxu1  ;;  %v3935_v55 = vpop.f32.mrf.mxu0 }
 0x196   : > { %4706 = vst [vmem:[#allocation18_spill] sm:$0xff] %v3933_v51  ;;  %2349 = vmatpush.bf16.msra.mxu3 %v3142_v34  ;;  %v3140_v34 = vld [vmem:[#allocation6 + $0x178] sm:$0xff]  ;;  %2437 = vmatpush.bf16.msra.mxu0 %v3151_v16 }
 0x197   : > { %4707 = vst [vmem:[#allocation19_spill] sm:$0xff] %v3935_v55  ;;  %2254 = vmatpush.bf16.msra.mxu2 %v3140_v34 }
 0x19a   : > { %2438 = vmatpush.bf16.msra.mxu0 %v3150_v4 }
 0x19c   : > { %v3937_v1 = vpop.f32.mrf.mxu3 }
 0x19d   : > { %4708 = vst [vmem:[#allocation20_spill] sm:$0xff] %v3937_v1  ;;  %v3939_v40 = vpop.f32.mrf.mxu1  ;;  %v3943_v18 = vpop.f32.mrf.mxu0 }
 0x19e   : > { %4709 = vst [vmem:[#allocation21_spill] sm:$0xff] %v3939_v40  ;;  %2439 = vmatpush.bf16.msra.mxu0 %v3149_v44 }
 0x19f   : > { %4710 = vst [vmem:[#allocation22_spill] sm:$0xff] %v3943_v18 }
 0x1a0   : > { %1882 = vmatmul.bf16.gmra.mxu2 %v3941_v10  ;;  %2144 = vmatmul.bf16.gmra.mxu0 %v3941_v10 }
 0x1a1   : > { %2060 = vmatmul.bf16.gmra.mxu3 %v1208_v35  ;;  %2198 = vmatmul.bf16.gmra.mxu1 %v3800_v15  ;;  %v893_v15 = vld [vmem:[#allocation2 + $0x1d1] sm:$0xff]  ;;  %v3141_v35 = vld [vmem:[#allocation6 + $0x180] sm:$0xff] }
 0x1a2   : > { %v1217_v3 = vpack.c.bf16 %v893_v15, %v892_v8  ;;  %2350 = vmatpush.bf16.msra.mxu3 %v3141_v35  ;;  %v830_v8 = vld [vmem:[#allocation2 + $0x1e7] sm:$0xff]  ;;  %v831_v15 = vld [vmem:[#allocation2 + $0x1ef] sm:$0xff] }
 0x1a3   : > { %v894_v35 = vld [vmem:[#allocation2 + $0x1e9] sm:$0xff]  ;;  %v3973_v41 = vpack.c.bf16 %v831_v15, %v830_v8 }
 0x1a4   : > { %v3948_v31 = vpop.f32.mrf.mxu3  ;;  %v1226_v34 = vpack.c.bf16 %v895_v26, %v894_v35  ;;  %v927_v8 = vld [vmem:[#allocation2 + $0x20f] sm:$0xff]  ;;  %v3248_v35 = vld [vmem:[#allocation2] sm:$0xff] }
 0x1a5   : > { %4711 = vst [vmem:[#allocation23_spill] sm:$0xff] %v3948_v31  ;;  %v3950_v42 = vpop.f32.mrf.mxu1  ;;  %v3952_v58 = vpop.f32.mrf.mxu0  ;;  %v994_v15 = vld [vmem:[#allocation2 + $0x4f] sm:$0xff]  ;;  %v3986_v44 = vpack.c.bf16 %v3248_v35, %v3248_v35 }
 0x1a6   : > { %4712 = vst [vmem:[#allocation24_spill] sm:$0xff] %v3950_v42  ;;  %v3988_v26 = vld [vmem:[#allocation2 + $0x130] sm:$0xff]  ;;  %v1025_v42 = vld [vmem:[#allocation2 + $0x48] sm:$0xff] }
 0x1a7   : > { %4713 = vst [vmem:[#allocation25_spill] sm:$0xff] %v3952_v58  ;;  %v3139_v35 = vld [vmem:[#allocation6 + $0x170] sm:$0xff] }
 0x1a8   : > { %4725 = vst [vmem:[#allocation37_spill] sm:$0xff] %v3986_v44  ;;  %2255 = vmatpush.bf16.msra.mxu2 %v3139_v35 }
 0x1ac   : > { %v3954_v9 = vpop.f32.mrf.mxu3 }
 0x1ad   : > { %4714 = vst [vmem:[#allocation26_spill] sm:$0xff] %v3954_v9  ;;  %v3956_v28 = vpop.f32.mrf.mxu1  ;;  %v3963_v56 = vpop.f32.mrf.mxu0  ;;  %v834_v9 = vld [vmem:[#allocation2 + $0x28] sm:$0xff] }
 0x1ae   : > { %4715 = vst [vmem:[#allocation27_spill] sm:$0xff] %v3956_v28  ;;  %v946_v28 = vld [vmem:[#allocation2 + $0x148] sm:$0xff] }
 0x1af   : > { %4716 = vst [vmem:[#allocation28_spill] sm:$0xff] %v3963_v56 }
 0x1b0   : > { %1887 = vmatmul.bf16.gmra.mxu2 %v3958_v29  ;;  %2149 = vmatmul.bf16.gmra.mxu0 %v3958_v29 }
 0x1b1   : > { %2065 = vmatmul.bf16.gmra.mxu3 %v1217_v3  ;;  %2203 = vmatmul.bf16.gmra.mxu1 %v3823_v52  ;;  %v3164_v3 = vld [vmem:[#allocation6 + $0x238] sm:$0xff] }
 0x1b2   : > { %2521 = vmatpush.bf16.msra.mxu1 %v3164_v3  ;;  %v926_v3 = vld [vmem:[#allocation2 + $0x207] sm:$0xff] }
 0x1b4   : > { %v3967_v62 = vpop.f32.mrf.mxu3 }
 0x1b5   : > { %v3965_v57 = vpop.f32.mrf.mxu1  ;;  %4718 = vst [vmem:[#allocation30_spill] sm:$0xff] %v3967_v62  ;;  %v3969_v52 = vpop.f32.mrf.mxu0 }
 0x1b6   : > { %4717 = vst [vmem:[#allocation29_spill] sm:$0xff] %v3965_v57 }
 0x1b7   : > { %4719 = vst [vmem:[#allocation31_spill] sm:$0xff] %v3969_v52 }
 0x1bc   : > { %v3975_v57 = vpop.f32.mrf.mxu3 }
 0x1bd   : > { %v3971_v25 = vpop.f32.mrf.mxu1  ;;  %4721 = vst [vmem:[#allocation33_spill] sm:$0xff] %v3975_v57  ;;  %v3982_v4 = vpop.f32.mrf.mxu0 }
 0x1be   : > { %4720 = vst [vmem:[#allocation32_spill] sm:$0xff] %v3971_v25  ;;  %v3990_v25 = vpack.c.bf16 %v927_v8, %v926_v3 }
 0x1bf   : > { %4723 = vst [vmem:[#allocation35_spill] sm:$0xff] %v3982_v4 }
 0x1c0   : > { %1892 = vmatmul.bf16.gmra.mxu2 %v3973_v41  ;;  %2154 = vmatmul.bf16.gmra.mxu0 %v3973_v41 }
 0x1c1   : > { %2070 = vmatmul.bf16.gmra.mxu3 %v1226_v34  ;;  %2208 = vmatmul.bf16.gmra.mxu1 %v3849_v21  ;;  %v993_v34 = vld [vmem:[#allocation2 + $0x47] sm:$0xff] }
 0x1c2   : > { %v1095_v21 = vpack.c.bf16 %v994_v15, %v993_v34  ;;  %v996_v34 = vld [vmem:[#allocation2 + $0x6f] sm:$0xff] }
 0x1c4   : > { %v3984_v62 = vpop.f32.mrf.mxu3 }
 0x1c5   : > { %v3980_v16 = vpop.f32.mrf.mxu1  ;;  %4724 = vst [vmem:[#allocation36_spill] sm:$0xff] %v3984_v62  ;;  %v3998_v62 = vpop.f32.mrf.mxu0 }
 0x1c6   : > { %4722 = vst [vmem:[#allocation34_spill] sm:$0xff] %v3980_v16  ;;  %v4726_v16 = vmax.f32 %v3855_v24, 0.0 }
 0x1c7   : > { %4727 = vst [vmem:[#allocation38_spill] sm:$0xff] %v3998_v62  ;;  %v947_v62 = vld [vmem:[#allocation2 + $0x150] sm:$0xff] }
 0x1c8   : > { %v1165_v4 = vpack.c.bf16 %v3988_v26, %v4726_v16  ;;  %v835_v16 = vld [vmem:[#allocation2 + $0x30] sm:$0xff]  ;;  %v4015_v31 = vpack.c.bf16 %v947_v62, %v946_v28 }
 0x1c9   : > { %v949_v28 = vld [vmem:[#allocation2 + $0x170] sm:$0xff] }
 0x1ca   : > { %v1028_v62 = vld [vmem:[#allocation2 + $0x70] sm:$0xff] }
 0x1cc   : > { %v4003_v3 = vpop.f32.mrf.mxu3 }
 0x1cd   : > { %4729 = vst [vmem:[#allocation40_spill] sm:$0xff] %v4003_v3  ;;  %v4007_v15 = vpop.f32.mrf.mxu0 }
 0x1ce   : > { %v3992_v57 = vpop.f32.mrf.mxu1  ;;  %4730 = vst [vmem:[#allocation41_spill] sm:$0xff] %v4007_v15 }
 0x1d0   : > { %1906 = vmatmul.bf16.vlgmr.msrb.gmra.mxu2 %v3986_v44  ;;  %2159 = vmatmul.bf16.gmra.mxu0 %v3990_v25  ;;  %v1026_v44 = vld [vmem:[#allocation2 + $0x50] sm:$0xff] }
 0x1d1   : > { %2351 = vmatmul.bf16.vlgmr.msra.gmra.mxu3 %v1095_v21  ;;  %2213 = vmatmul.bf16.gmra.mxu1 %v1165_v4  ;;  %v3163_v21 = vld [vmem:[#allocation6 + $0x230] sm:$0xff]  ;;  %v995_v4 = vld [vmem:[#allocation2 + $0x67] sm:$0xff]  ;;  %v1096_v15 = vpack.c.bf16 %v1026_v44, %v1025_v42 }
 0x1d2   : > { %2522 = vmatpush.bf16.msra.mxu1 %v3163_v21  ;;  %v1104_v3 = vpack.c.bf16 %v996_v34, %v995_v4  ;;  %v997_v42 = vld [vmem:[#allocation2 + $0x87] sm:$0xff] }
 0x1d3   : > { %v4001_v52 = vpop.f32.mrf.mxu2 }
 0x1d4   : > { %4728 = vst [vmem:[#allocation39_spill] sm:$0xff] %v4001_v52  ;;  %v4011_v56 = vpop.f32.mrf.mxu3  ;;  %v1099_v52 = vpack.c.bf16 %v835_v16, %v834_v9  ;;  %v998_v9 = vld [vmem:[#allocation2 + $0x8f] sm:$0xff] }
 0x1d5   : > { %4732 = vst [vmem:[#allocation43_spill] sm:$0xff] %v4011_v56  ;;  %v4020_v58 = vpop.f32.mrf.mxu0  ;;  %v948_v16 = vld [vmem:[#allocation2 + $0x168] sm:$0xff]  ;;  %v1113_v44 = vpack.c.bf16 %v998_v9, %v997_v42 }
 0x1d6   : > { %v4005_v8 = vpop.f32.mrf.mxu1  ;;  %4734 = vst [vmem:[#allocation45_spill] sm:$0xff] %v4020_v58  ;;  %v4032_v4 = vpack.c.bf16 %v949_v28, %v948_v16  ;;  %v1000_v16 = vld [vmem:[#allocation2 + $0xaf] sm:$0xff] }
 0x1d7   : > { %v3162_v28 = vld [vmem:[#allocation6 + $0x228] sm:$0xff] }
 0x1d8   : > { %2523 = vmatpush.bf16.msra.mxu1 %v3162_v28 }
 0x1db   : > { %v4009_v24 = vpop.f32.mrf.mxu2 }
 0x1dc   : > { %4731 = vst [vmem:[#allocation42_spill] sm:$0xff] %v4009_v24  ;;  %v4024_v56 = vpop.f32.mrf.mxu3 }
 0x1dd   : > { %4735 = vst [vmem:[#allocation46_spill] sm:$0xff] %v4024_v56  ;;  %v4030_v34 = vpop.f32.mrf.mxu0 }
 0x1de   : > { %v4013_v35 = vpop.f32.mrf.mxu1  ;;  %4737 = vst [vmem:[#allocation48_spill] sm:$0xff] %v4030_v34  ;;  %v999_v34 = vld [vmem:[#allocation2 + $0xa7] sm:$0xff] }
 0x1e0   : > { %1911 = vmatmul.bf16.gmra.mxu2 %v1099_v52  ;;  %2440 = vmatmul.bf16.vlgmr.msra.gmra.mxu0 %v1096_v15 }
 0x1e1   : > { %2356 = vmatmul.bf16.gmra.mxu3 %v1104_v3  ;;  %2218 = vmatmul.bf16.gmra.mxu1 %v4015_v31  ;;  %v1027_v3 = vld [vmem:[#allocation2 + $0x68] sm:$0xff] }
 0x1e3   : > { %v4018_v24 = vpop.f32.mrf.mxu2 }
 0x1e4   : > { %4733 = vst [vmem:[#allocation44_spill] sm:$0xff] %v4018_v24  ;;  %v1105_v24 = vpack.c.bf16 %v1028_v62, %v1027_v3  ;;  %v4035_v56 = vpop.f32.mrf.mxu3  ;;  %v1030_v3 = vld [vmem:[#allocation2 + $0x90] sm:$0xff] }
 0x1e5   : > { %4738 = vst [vmem:[#allocation49_spill] sm:$0xff] %v4035_v56  ;;  %v4041_v9 = vpop.f32.mrf.mxu0  ;;  %v1122_v56 = vpack.c.bf16 %v1000_v16, %v999_v34  ;;  %v952_v34 = vld [vmem:[#allocation2 + $0x1a8] sm:$0xff]  ;;  %v953_v16 = vld [vmem:[#allocation2 + $0x1b0] sm:$0xff] }
 0x1e6   : > { %v4022_v21 = vpop.f32.mrf.mxu1  ;;  %4741 = vst [vmem:[#allocation52_spill] sm:$0xff] %v4041_v9 }
 0x1eb   : > { %v4026_v40 = vpop.f32.mrf.mxu2 }
 0x1ec   : > { %4736 = vst [vmem:[#allocation47_spill] sm:$0xff] %v4026_v40  ;;  %v3138_v40 = vld [vmem:[#allocation6 + $0x168] sm:$0xff]  ;;  %v4045_v62 = vpop.f32.mrf.mxu3 }
 0x1ed   : > { %2256 = vmatpush.bf16.msra.mxu2 %v3138_v40  ;;  %4743 = vst [vmem:[#allocation54_spill] sm:$0xff] %v4045_v62 }
 0x1ee   : > { %v4028_v52 = vpop.f32.mrf.mxu1 }
 0x1f0   : > { %1916 = vmatmul.bf16.gmra.mxu2 %v1096_v15  ;;  %2445 = vmatmul.bf16.gmra.mxu0 %v1105_v24  ;;  %v950_v15 = vld [vmem:[#allocation2 + $0x188] sm:$0xff] }
 0x1f1   : > { %2361 = vmatmul.bf16.gmra.mxu3 %v1113_v44  ;;  %2223 = vmatmul.bf16.gmra.mxu1 %v4032_v4  ;;  %v951_v44 = vld [vmem:[#allocation2 + $0x190] sm:$0xff] }
 0x1f2   : > { %v4049_v40 = vpack.c.bf16 %v951_v44, %v950_v15  ;;  %v1032_v15 = vld [vmem:[#allocation2 + $0xb0] sm:$0xff] }
 0x1f3   : > { %v4037_v58 = vpop.f32.mrf.mxu2 }
 0x1f4   : > { %4739 = vst [vmem:[#allocation50_spill] sm:$0xff] %v4037_v58  ;;  %v1029_v58 = vld [vmem:[#allocation2 + $0x88] sm:$0xff]  ;;  %v4056_v9 = vpop.f32.mrf.mxu3 }
 0x1f5   : > { %v1114_v51 = vpack.c.bf16 %v1030_v3, %v1029_v58  ;;  %4747 = vst [vmem:[#allocation58_spill] sm:$0xff] %v4056_v9  ;;  %v1031_v58 = vld [vmem:[#allocation2 + $0xa8] sm:$0xff] }
 0x1f6   : > { %v4039_v1 = vpop.f32.mrf.mxu1  ;;  %v1123_v3 = vpack.c.bf16 %v1032_v15, %v1031_v58  ;;  %v954_v15 = vld [vmem:[#allocation2 + $0x1c8] sm:$0xff]  ;;  %v1034_v58 = vld [vmem:[#allocation2 + $0xd0] sm:$0xff] }
 0x1f7   : > { %4740 = vst [vmem:[#allocation51_spill] sm:$0xff] %v4039_v1  ;;  %v1074_v1 = vld [vmem:[#allocation2 + $0x151] sm:$0xff] }
 0x1fb   : > { %v4043_v42 = vpop.f32.mrf.mxu2 }
 0x1fc   : > { %4742 = vst [vmem:[#allocation53_spill] sm:$0xff] %v4043_v42  ;;  %v4052_v42 = vpop.f32.mrf.mxu0 }
 0x1fd   : > { %4745 = vst [vmem:[#allocation56_spill] sm:$0xff] %v4052_v42  ;;  %v4068_v42 = vpop.f32.mrf.mxu3 }
 0x1fe   : > { %v4047_v18 = vpop.f32.mrf.mxu1  ;;  %4752 = vst [vmem:[#allocation63_spill] sm:$0xff] %v4068_v42 }
 0x1ff   : > { %4744 = vst [vmem:[#allocation55_spill] sm:$0xff] %v4047_v18 }
 0x200   : > { %1921 = vmatmul.bf16.gmra.mxu2 %v1105_v24  ;;  %2450 = vmatmul.bf16.gmra.mxu0 %v1114_v51  ;;  %v4066_v24 = vpack.c.bf16 %v953_v16, %v952_v34  ;;  %v3161_v16 = vld [vmem:[#allocation6 + $0x220] sm:$0xff] }
 0x201   : > { %2366 = vmatmul.bf16.gmra.mxu3 %v1122_v56  ;;  %2228 = vmatmul.bf16.gmra.mxu1 %v4049_v40 }
 0x202   : > { %2524 = vmatpush.bf16.msra.mxu1 %v3161_v16  ;;  %v3159_v16 = vld [vmem:[#allocation6 + $0x210] sm:$0xff] }
 0x203   : > { %v4054_v62 = vpop.f32.mrf.mxu2 }
 0x204   : > { %4746 = vst [vmem:[#allocation57_spill] sm:$0xff] %v4054_v62  ;;  %v4062_v44 = vpop.f32.mrf.mxu0 }
 0x205   : > { %4750 = vst [vmem:[#allocation61_spill] sm:$0xff] %v4062_v44 }
 0x206   : > { %v4058_v45 = vpop.f32.mrf.mxu1 }
 0x207   : > { %4748 = vst [vmem:[#allocation59_spill] sm:$0xff] %v4058_v45 }
 0x20b   : > { %v4060_v28 = vpop.f32.mrf.mxu2 }
 0x20c   : > { %4749 = vst [vmem:[#allocation60_spill] sm:$0xff] %v4060_v28  ;;  %v3137_v28 = vld [vmem:[#allocation6 + $0x160] sm:$0xff]  ;;  %v4074_v9 = vpop.f32.mrf.mxu0 }
 0x20d   : > { %2257 = vmatpush.bf16.msra.mxu2 %v3137_v28  ;;  %4754 = vst [vmem:[#allocation65_spill] sm:$0xff] %v4074_v9 }
 0x20e   : > { %v4064_v56 = vpop.f32.mrf.mxu1 }
 0x20f   : > { %4751 = vst [vmem:[#allocation62_spill] sm:$0xff] %v4064_v56  ;;  %v4078_v56 = vpop.f32.mrf.mxu3 }
 0x210   : > { %1926 = vmatmul.bf16.gmra.mxu2 %v1114_v51  ;;  %2455 = vmatmul.bf16.gmra.mxu0 %v1123_v3  ;;  %4756 = vst [vmem:[#allocation67_spill] sm:$0xff] %v4078_v56  ;;  %v955_v51 = vld [vmem:[#allocation2 + $0x1d0] sm:$0xff] }
 0x211   : > { %2371 = vmatmul.bf16.gmra.mxu3 %v3807_v33  ;;  %2233 = vmatmul.bf16.gmra.mxu1 %v4066_v24  ;;  %v1033_v33 = vld [vmem:[#allocation2 + $0xc8] sm:$0xff]  ;;  %v4082_v42 = vpack.c.bf16 %v955_v51, %v954_v15 }
 0x212   : > { %v1132_v45 = vpack.c.bf16 %v1034_v58, %v1033_v33  ;;  %v3158_v15 = vld [vmem:[#allocation6 + $0x208] sm:$0xff]  ;;  %v1036_v58 = vld [vmem:[#allocation2 + $0xf0] sm:$0xff] }
 0x213   : > { %v4072_v62 = vpop.f32.mrf.mxu2 }
 0x214   : > { %4753 = vst [vmem:[#allocation64_spill] sm:$0xff] %v4072_v62  ;;  %v4085_v28 = vpop.f32.mrf.mxu0  ;;  %v3160_v62 = vld [vmem:[#allocation6 + $0x218] sm:$0xff] }
 0x215   : > { %4758 = vst [vmem:[#allocation69_spill] sm:$0xff] %v4085_v28  ;;  %2525 = vmatpush.bf16.msra.mxu1 %v3160_v62  ;;  %v3157_v28 = vld [vmem:[#allocation6 + $0x200] sm:$0xff]  ;;  %v4766_v62 = vmax.f32 %v3813_v39, 0.0  ;;  %v1038_v39 = vld [vmem:[#allocation2 + $0x110] sm:$0xff] }
 0x216   : > { %v4076_v44 = vpop.f32.mrf.mxu1 }
 0x217   : > { %4755 = vst [vmem:[#allocation66_spill] sm:$0xff] %v4076_v44  ;;  %v4092_v9 = vpop.f32.mrf.mxu3 }
 0x218   : > { %4761 = vst [vmem:[#allocation72_spill] sm:$0xff] %v4092_v9 }
 0x219   : > { %2526 = vmatpush.bf16.msra.mxu1 %v3159_v16 }
 0x21b   : > { %v4080_v34 = vpop.f32.mrf.mxu2 }
 0x21c   : > { %4757 = vst [vmem:[#allocation68_spill] sm:$0xff] %v4080_v34  ;;  %v4094_v51 = vpop.f32.mrf.mxu0 }
 0x21d   : > { %4762 = vst [vmem:[#allocation73_spill] sm:$0xff] %v4094_v51  ;;  %2527 = vmatpush.bf16.msra.mxu1 %v3158_v15 }
 0x21e   : > { %v4088_v56 = vpop.f32.mrf.mxu1 }
 0x21f   : > { %4759 = vst [vmem:[#allocation70_spill] sm:$0xff] %v4088_v56  ;;  %v4102_v56 = vpop.f32.mrf.mxu3 }
 0x220   : > { %1931 = vmatmul.bf16.gmra.mxu2 %v1123_v3  ;;  %2460 = vmatmul.bf16.gmra.mxu0 %v1132_v45  ;;  %4765 = vst [vmem:[#allocation76_spill] sm:$0xff] %v4102_v56 }
 0x221   : > { %2376 = vmatmul.bf16.gmra.mxu3 %v3835_v6  ;;  %2238 = vmatmul.bf16.gmra.mxu1 %v4082_v42  ;;  %v4098_v6 = vld [vmem:[#allocation2 + $0x1e8] sm:$0xff] }
 0x222   : > { %v1219_v9 = vpack.c.bf16 %v4766_v62, %v4098_v6  ;;  %2528 = vmatpush.bf16.msra.mxu1 %v3157_v28  ;;  %v1037_v28 = vld [vmem:[#allocation2 + $0x108] sm:$0xff] }
 0x223   : > { %v4090_v34 = vpop.f32.mrf.mxu2 }
 0x224   : > { %4760 = vst [vmem:[#allocation71_spill] sm:$0xff] %v4090_v34  ;;  %v1035_v34 = vld [vmem:[#allocation2 + $0xe8] sm:$0xff]  ;;  %v4110_v51 = vpop.f32.mrf.mxu0 }
 0x225   : > { %v1141_v16 = vpack.c.bf16 %v1036_v58, %v1035_v34  ;;  %4768 = vst [vmem:[#allocation78_spill] sm:$0xff] %v4110_v51  ;;  %v4772_v34 = vmax.f32 %v3827_v54, 0.0 }
 0x226   : > { %v4100_v33 = vpop.f32.mrf.mxu1 }
 0x227   : > { %4764 = vst [vmem:[#allocation75_spill] sm:$0xff] %v4100_v33  ;;  %v4114_v56 = vpop.f32.mrf.mxu3 }
 0x228   : > { %4770 = vst [vmem:[#allocation80_spill] sm:$0xff] %v4114_v56 }
 0x22b   : > { %v4096_v3 = vpop.f32.mrf.mxu2 }
 0x22c   : > { %4763 = vst [vmem:[#allocation74_spill] sm:$0xff] %v4096_v3  ;;  %v3136_v3 = vld [vmem:[#allocation6 + $0x158] sm:$0xff] }
 0x22d   : > { %2258 = vmatpush.bf16.msra.mxu2 %v3136_v3  ;;  %v1150_v3 = vpack.c.bf16 %v1038_v39, %v1037_v28  ;;  %v1039_v39 = vld [vmem:[#allocation2 + $0x128] sm:$0xff] }
 0x22e   : > { %v4112_v33 = vpop.f32.mrf.mxu1 }
 0x22f   : > { %4769 = vst [vmem:[#allocation79_spill] sm:$0xff] %v4112_v33  ;;  %v4127_v62 = vpop.f32.mrf.mxu3 }
 0x230   : > { %1936 = vmatmul.bf16.gmra.mxu2 %v1132_v45  ;;  %2465 = vmatmul.bf16.gmra.mxu0 %v1141_v16  ;;  %v4773_v45 = vmax.f32 %v3841_v12, 0.0  ;;  %4776 = vst [vmem:[#allocation84_spill] sm:$0xff] %v4127_v62 }
 0x231   : > { %2381 = vmatmul.bf16.gmra.mxu3 %v3860_v30  ;;  %2243 = vmatmul.bf16.gmra.mxu1 %v1219_v9  ;;  %v4122_v9 = vpop.f32.mrf.mxu0 }
 0x232   : > { %v1228_v30 = vpack.c.bf16 %v4773_v45, %v4772_v34  ;;  %4774 = vst [vmem:[#allocation82_spill] sm:$0xff] %v4122_v9  ;;  %v1058_v45 = vld [vmem:[#allocation2 + $0x51] sm:$0xff] }
 0x233   : > { %v4108_v15 = vpop.f32.mrf.mxu2 }
 0x234   : > { %4767 = vst [vmem:[#allocation77_spill] sm:$0xff] %v4108_v15 }
 0x236   : > { %v4125_v58 = vpop.f32.mrf.mxu1 }
 0x237   : > { %4775 = vst [vmem:[#allocation83_spill] sm:$0xff] %v4125_v58  ;;  %v4137_v34 = vpop.f32.mrf.mxu3  ;;  %v1068_v58 = vld [vmem:[#allocation2 + $0xf1] sm:$0xff] }
 0x238   : > { %4781 = vst [vmem:[#allocation89_spill] sm:$0xff] %v4137_v34 }
 0x239   : > { %v4131_v15 = vpop.f32.mrf.mxu0 }
 0x23a   : > { %4778 = vst [vmem:[#allocation86_spill] sm:$0xff] %v4131_v15 }
 0x23b   : > { %v4116_v44 = vpop.f32.mrf.mxu2 }
 0x23c   : > { %4771 = vst [vmem:[#allocation81_spill] sm:$0xff] %v4116_v44 }
 0x23e   : > { %v4133_v54 = vpop.f32.mrf.mxu1 }
 0x23f   : > { %4779 = vst [vmem:[#allocation87_spill] sm:$0xff] %v4133_v54  ;;  %v4150_v62 = vpop.f32.mrf.mxu3 }
 0x240   : > { %1941 = vmatmul.bf16.gmra.mxu2 %v1141_v16  ;;  %2470 = vmatmul.bf16.gmra.mxu0 %v1150_v3  ;;  %v1057_v16 = vld [vmem:[#allocation2 + $0x49] sm:$0xff]  ;;  %4784 = vst [vmem:[#allocation92_spill] sm:$0xff] %v4150_v62 }
 0x241   : > { %2386 = vmatmul.bf16.gmra.mxu3 %v3871_v43  ;;  %2248 = vmatmul.bf16.gmra.mxu1 %v1228_v30  ;;  %v1159_v43 = vpack.c.bf16 %v3988_v26, %v1039_v39  ;;  %v4140_v28 = vpack.c.bf16 %v1058_v45, %v1057_v16  ;;  %v3135_v30 = vld [vmem:[#allocation6 + $0x150] sm:$0xff] }
 0x242   : > { %2259 = vmatpush.bf16.msra.mxu2 %v3135_v30  ;;  %v1059_v26 = vld [vmem:[#allocation2 + $0x69] sm:$0xff]  ;;  %v1060_v39 = vld [vmem:[#allocation2 + $0x71] sm:$0xff] }
 0x243   : > { %v4129_v44 = vpop.f32.mrf.mxu2  ;;  %v4158_v16 = vpack.c.bf16 %v1060_v39, %v1059_v26  ;;  %v1061_v26 = vld [vmem:[#allocation2 + $0x89] sm:$0xff]  ;;  %v1062_v39 = vld [vmem:[#allocation2 + $0x91] sm:$0xff] }
 0x244   : > { %4777 = vst [vmem:[#allocation85_spill] sm:$0xff] %v4129_v44  ;;  %v4144_v44 = vpop.f32.mrf.mxu0 }
 0x245   : > { %4782 = vst [vmem:[#allocation90_spill] sm:$0xff] %v4144_v44 }
 0x246   : > { %v4148_v34 = vpop.f32.mrf.mxu1 }
 0x247   : > { %4783 = vst [vmem:[#allocation91_spill] sm:$0xff] %v4148_v34  ;;  %v4160_v45 = vpop.f32.mrf.mxu3 }
 0x248   : > { %4787 = vst [vmem:[#allocation95_spill] sm:$0xff] %v4160_v45  ;;  %v4175_v45 = vpack.c.bf16 %v1062_v39, %v1061_v26 }
 0x24b   : > { %v4135_v12 = vpop.f32.mrf.mxu2 }
 0x24c   : > { %4780 = vst [vmem:[#allocation88_spill] sm:$0xff] %v4135_v12 }
 0x250   : > { %1946 = vmatmul.bf16.gmra.mxu2 %v1150_v3  ;;  %2475 = vmatmul.bf16.gmra.mxu0 %v1159_v43  ;;  %v4154_v3 = vpop.f32.mrf.mxu0 }
 0x251   : > { %2391 = vmatmul.bf16.gmra.mxu3 %v3892_v61  ;;  %2529 = vmatmul.bf16.vlgmr.msra.gmra.mxu1 %v4140_v28  ;;  %4785 = vst [vmem:[#allocation93_spill] sm:$0xff] %v4154_v3  ;;  %v4156_v61 = vpop.f32.mrf.mxu1  ;;  %v4171_v3 = vpop.f32.mrf.mxu3 }
 0x252   : > { %4786 = vst [vmem:[#allocation94_spill] sm:$0xff] %v4156_v61 }
 0x253   : > { %v4146_v12 = vpop.f32.mrf.mxu2  ;;  %4790 = vst [vmem:[#allocation98_spill] sm:$0xff] %v4171_v3 }
 0x258   : > { %v4167_v62 = vpop.f32.mrf.mxu0 }
 0x259   : > { %4788 = vst [vmem:[#allocation96_spill] sm:$0xff] %v4167_v62  ;;  %v4169_v44 = vpop.f32.mrf.mxu1  ;;  %v4187_v9 = vpop.f32.mrf.mxu3 }
 0x25a   : > { %4789 = vst [vmem:[#allocation97_spill] sm:$0xff] %v4169_v44 }
 0x25b   : > { %v4152_v15 = vpop.f32.mrf.mxu2  ;;  %4793 = vst [vmem:[#allocation101_spill] sm:$0xff] %v4187_v9 }
 0x260   : > { %1951 = vmatmul.bf16.gmra.mxu2 %v1159_v43  ;;  %2480 = vmatmul.bf16.gmra.mxu0 %v4015_v31  ;;  %v4179_v43 = vpop.f32.mrf.mxu0 }
 0x261   : > { %2396 = vmatmul.bf16.gmra.mxu3 %v3909_v17  ;;  %2534 = vmatmul.bf16.gmra.mxu1 %v4158_v16  ;;  %v3134_v17 = vld [vmem:[#allocation6 + $0x148] sm:$0xff]  ;;  %4791 = vst [vmem:[#allocation99_spill] sm:$0xff] %v4179_v43  ;;  %v4183_v62 = vpop.f32.mrf.mxu1  ;;  %v4195_v43 = vpop.f32.mrf.mxu3 }
 0x262   : > { %2260 = vmatpush.bf16.msra.mxu2 %v3134_v17  ;;  %4792 = vst [vmem:[#allocation100_spill] sm:$0xff] %v4183_v62 }
 0x263   : > { %v4165_v30 = vpop.f32.mrf.mxu2 }
 0x268   : > { %v4189_v26 = vpop.f32.mrf.mxu0 }
 0x269   : > { %4794 = vst [vmem:[#allocation102_spill] sm:$0xff] %v4189_v26  ;;  %v4193_v51 = vpop.f32.mrf.mxu1  ;;  %v4209_v62 = vpop.f32.mrf.mxu3 }
 0x26a   : > { %4795 = vst [vmem:[#allocation103_spill] sm:$0xff] %v4193_v51 }
 0x26b   : > { %v4173_v56 = vpop.f32.mrf.mxu2 }
 0x270   : > { %1956 = vmatmul.bf16.gmra.mxu2 %v4015_v31  ;;  %2485 = vmatmul.bf16.gmra.mxu0 %v4032_v4  ;;  %v1063_v31 = vld [vmem:[#allocation2 + $0xa9] sm:$0xff]  ;;  %v4205_v9 = vpop.f32.mrf.mxu0 }
 0x271   : > { %2401 = vmatmul.bf16.gmra.mxu3 %v3926_v38  ;;  %2539 = vmatmul.bf16.gmra.mxu1 %v4175_v45  ;;  %v1064_v38 = vld [vmem:[#allocation2 + $0xb1] sm:$0xff]  ;;  %4796 = vst [vmem:[#allocation104_spill] sm:$0xff] %v4205_v9  ;;  %v4207_v26 = vpop.f32.mrf.mxu1  ;;  %v4223_v9 = vpop.f32.mrf.mxu3 }
 0x272   : > { %v4197_v44 = vpack.c.bf16 %v1064_v38, %v1063_v31  ;;  %4797 = vst [vmem:[#allocation105_spill] sm:$0xff] %v4207_v26  ;;  %v1065_v31 = vld [vmem:[#allocation2 + $0xc9] sm:$0xff]  ;;  %v1066_v38 = vld [vmem:[#allocation2 + $0xd1] sm:$0xff] }
 0x273   : > { %v4185_v3 = vpop.f32.mrf.mxu2 }
 0x278   : > { %v4213_v61 = vpop.f32.mrf.mxu0 }
 0x279   : > { %v4219_v34 = vpop.f32.mrf.mxu1 }
 0x27a   : > { %4799 = vst [vmem:[#allocation107_spill] sm:$0xff] %v4219_v34 }
 0x27b   : > { %v4191_v39 = vpop.f32.mrf.mxu2 }
 0x280   : > { %1961 = vmatmul.bf16.gmra.mxu2 %v4032_v4  ;;  %2490 = vmatmul.bf16.gmra.mxu0 %v4049_v40  ;;  %v4215_v4 = vpack.c.bf16 %v1066_v38, %v1065_v31  ;;  %v4227_v54 = vpop.f32.mrf.mxu0 }
 0x281   : > { %2406 = vmatmul.bf16.gmra.mxu3 %v3941_v10  ;;  %2544 = vmatmul.bf16.gmra.mxu1 %v4197_v44  ;;  %v3133_v10 = vld [vmem:[#allocation6 + $0x140] sm:$0xff]  ;;  %v4229_v31 = vpop.f32.mrf.mxu1 }
 0x282   : > { %2261 = vmatpush.bf16.msra.mxu2 %v3133_v10  ;;  %4801 = vst [vmem:[#allocation109_spill] sm:$0xff] %v4229_v31 }
 0x283   : > { %v4203_v17 = vpop.f32.mrf.mxu2 }
 0x288   : > { %v4241_v10 = vpop.f32.mrf.mxu0 }
 0x289   : > { %v4245_v31 = vpop.f32.mrf.mxu1 }
 0x28a   : > { %4804 = vst [vmem:[#allocation112_spill] sm:$0xff] %v4245_v31 }
 0x28b   : > { %v4211_v51 = vpop.f32.mrf.mxu2 }
 0x28c   : > { %4798 = vst [vmem:[#allocation106_spill] sm:$0xff] %v4211_v51  ;;  %v961_v51 = vld [vmem:[#allocation2 + $0x31] sm:$0xff] }
 0x290   : > { %1966 = vmatmul.bf16.gmra.mxu2 %v4049_v40  ;;  %2495 = vmatmul.bf16.gmra.mxu0 %v4066_v24  ;;  %v4233_v40 = vpop.f32.mrf.mxu3 }
 0x291   : > { %2411 = vmatmul.bf16.gmra.mxu3 %v3958_v29  ;;  %2549 = vmatmul.bf16.gmra.mxu1 %v4215_v4  ;;  %v1067_v29 = vld [vmem:[#allocation2 + $0xe9] sm:$0xff] }
 0x292   : > { %v4235_v34 = vpack.c.bf16 %v1068_v58, %v1067_v29  ;;  %v1052_v58 = vld [vmem:[#allocation2 + $0x1f0] sm:$0xff] }
 0x293   : > { %v4225_v26 = vpop.f32.mrf.mxu2  ;;  %v1069_v29 = vld [vmem:[#allocation2 + $0x109] sm:$0xff]  ;;  %v1213_v7 = vpack.c.bf16 %v1052_v58, %v4098_v6  ;;  %v1072_v6 = vld [vmem:[#allocation2 + $0x131] sm:$0xff] }
 0x294   : > { %4800 = vst [vmem:[#allocation108_spill] sm:$0xff] %v4225_v26  ;;  %v1070_v26 = vld [vmem:[#allocation2 + $0x111] sm:$0xff] }
 0x295   : > { %v4256_v18 = vpack.c.bf16 %v1070_v26, %v1069_v29  ;;  %v1053_v26 = vld [vmem:[#allocation2 + $0x208] sm:$0xff]  ;;  %v1054_v58 = vld [vmem:[#allocation2 + $0x210] sm:$0xff] }
 0x296   : > { %v1071_v29 = vld [vmem:[#allocation2 + $0x129] sm:$0xff]  ;;  %v1222_v36 = vpack.c.bf16 %v1054_v58, %v1053_v26  ;;  %v4284_v26 = vpack.c.bf16 %v1074_v1, %v1073_v20 }
 0x29b   : > { %v4231_v38 = vpop.f32.mrf.mxu2 }
 0x29c   : > { %4802 = vst [vmem:[#allocation110_spill] sm:$0xff] %v4231_v38  ;;  %v4247_v38 = vpop.f32.mrf.mxu3 }
 0x2a0   : > { %1971 = vmatmul.bf16.gmra.mxu2 %v4066_v24  ;;  %2500 = vmatmul.bf16.gmra.mxu0 %v4082_v42  ;;  %v4251_v24 = vpop.f32.mrf.mxu0 }
 0x2a1   : > { %2416 = vmatmul.bf16.gmra.mxu3 %v3973_v41  ;;  %2554 = vmatmul.bf16.gmra.mxu1 %v4235_v34  ;;  %v4253_v41 = vpop.f32.mrf.mxu1 }
 0x2a2   : > { %4806 = vst [vmem:[#allocation114_spill] sm:$0xff] %v4253_v41 }
 0x2a3   : > { %v4243_v33 = vpop.f32.mrf.mxu2 }
 0x2a4   : > { %4803 = vst [vmem:[#allocation111_spill] sm:$0xff] %v4243_v33  ;;  %v4258_v27 = vpop.f32.mrf.mxu3 }
 0x2a5   : > { %4807 = vst [vmem:[#allocation115_spill] sm:$0xff] %v4258_v27  ;;  %v4271_v27 = vpack.c.bf16 %v1072_v6, %v1071_v29  ;;  %v1075_v29 = vld [vmem:[#allocation2 + $0x169] sm:$0xff] }
 0x2a9   : > { %v4267_v33 = vpop.f32.mrf.mxu1 }
 0x2aa   : > { %4809 = vst [vmem:[#allocation117_spill] sm:$0xff] %v4267_v33 }
 0x2ab   : > { %v4249_v55 = vpop.f32.mrf.mxu2 }
 0x2ac   : > { %4805 = vst [vmem:[#allocation113_spill] sm:$0xff] %v4249_v55  ;;  %v4265_v55 = vpop.f32.mrf.mxu0 }
 0x2b0   : > { %1976 = vmatmul.bf16.gmra.mxu2 %v4082_v42  ;;  %2505 = vmatmul.bf16.gmra.mxu0 %v1213_v7 }
 0x2b1   : > { %2421 = vmatmul.bf16.gmra.mxu3 %v3990_v25  ;;  %2559 = vmatmul.bf16.gmra.mxu1 %v4256_v18  ;;  %v4276_v42 = vpop.f32.mrf.mxu1 }
 0x2b2   : > { %4811 = vst [vmem:[#allocation119_spill] sm:$0xff] %v4276_v42  ;;  %v1076_v42 = vld [vmem:[#allocation2 + $0x171] sm:$0xff] }
 0x2b3   : > { %v4263_v31 = vpop.f32.mrf.mxu2 }
 0x2b4   : > { %4808 = vst [vmem:[#allocation116_spill] sm:$0xff] %v4263_v31  ;;  %v4273_v25 = vpop.f32.mrf.mxu0 }
 0x2b9   : > { %v4282_v19 = vpop.f32.mrf.mxu1 }
 0x2ba   : > { %4814 = vst [vmem:[#allocation122_spill] sm:$0xff] %v4282_v19  ;;  %v1080_v19 = vld [vmem:[#allocation2 + $0x1b1] sm:$0xff] }
 0x2bb   : > { %v4269_v41 = vpop.f32.mrf.mxu2 }
 0x2bc   : > { %4810 = vst [vmem:[#allocation118_spill] sm:$0xff] %v4269_v41  ;;  %v960_v41 = vld [vmem:[#allocation2 + $0x29] sm:$0xff] }
 0x2bd   : > { %v1094_v6 = vpack.c.bf16 %v961_v51, %v960_v41  ;;  %v1077_v41 = vld [vmem:[#allocation2 + $0x189] sm:$0xff] }
 0x2c0   : > { %1981 = vmatmul.bf16.gmra.mxu2 %v1213_v7  ;;  %2510 = vmatmul.bf16.gmra.mxu0 %v1222_v36 }
 0x2c1   : > { %2564 = vmatmul.bf16.gmra.mxu1 %v4271_v27  ;;  %v4289_v36 = vpop.f32.mrf.mxu1 }
 0x2c2   : > { %4816 = vst [vmem:[#allocation124_spill] sm:$0xff] %v4289_v36 }
 0x2c3   : > { %v4278_v31 = vpop.f32.mrf.mxu2 }
 0x2c4   : > { %4812 = vst [vmem:[#allocation120_spill] sm:$0xff] %v4278_v31 }
 0x2c9   : > { %v4296_v31 = vpop.f32.mrf.mxu1 }
 0x2ca   : > { %4818 = vst [vmem:[#allocation126_spill] sm:$0xff] %v4296_v31  ;;  %v1079_v31 = vld [vmem:[#allocation2 + $0x1a9] sm:$0xff] }
 0x2cb   : > { %v4280_v33 = vpop.f32.mrf.mxu2 }
 0x2cc   : > { %4813 = vst [vmem:[#allocation121_spill] sm:$0xff] %v4280_v33  ;;  %v4293_v33 = vpack.c.bf16 %v1076_v42, %v1075_v29 }
 0x2d0   : > { %2262 = vmatmul.bf16.vlgmr.msra.gmra.mxu2 %v1094_v6  ;;  %v1078_v6 = vld [vmem:[#allocation2 + $0x191] sm:$0xff] }
 0x2d1   : > { %2569 = vmatmul.bf16.gmra.mxu1 %v4284_v26  ;;  %v4301_v1 = vpop.f32.mrf.mxu1  ;;  %v4305_v36 = vpack.c.bf16 %v1078_v6, %v1077_v41 }
 0x2d2   : > { %4820 = vst [vmem:[#allocation128_spill] sm:$0xff] %v4301_v1  ;;  %v4315_v1 = vpack.c.bf16 %v1080_v19, %v1079_v31  ;;  %v1083_v31 = vld [vmem:[#allocation2 + $0x1e9] sm:$0xff] }
 0x2d3   : > { %v4287_v7 = vpop.f32.mrf.mxu2 }
 0x2d4   : > { %4815 = vst [vmem:[#allocation123_spill] sm:$0xff] %v4287_v7 }
 0x2db   : > { %v4291_v58 = vpop.f32.mrf.mxu2 }
 0x2dc   : > { %4817 = vst [vmem:[#allocation125_spill] sm:$0xff] %v4291_v58 }
 0x2e0   : > { %2267 = vmatmul.bf16.gmra.mxu2 %v4140_v28  ;;  %v4311_v28 = vpop.f32.mrf.mxu1 }
 0x2e1   : > { %2574 = vmatmul.bf16.gmra.mxu1 %v4293_v33  ;;  %4823 = vst [vmem:[#allocation131_spill] sm:$0xff] %v4311_v28 }
 0x2e3   : > { %v4299_v20 = vpop.f32.mrf.mxu2 }
 0x2e4   : > { %4819 = vst [vmem:[#allocation127_spill] sm:$0xff] %v4299_v20 }
 0x2e8   : > { %v2530_v20 = vpop.f32.mrf.mxu1 }
 0x2eb   : > { %v4303_v51 = vpop.f32.mrf.mxu2 }
 0x2ec   : > { %4821 = vst [vmem:[#allocation129_spill] sm:$0xff] %v4303_v51  ;;  %v1081_v51 = vld [vmem:[#allocation2 + $0x1c9] sm:$0xff] }
 0x2f0   : > { %2272 = vmatmul.bf16.gmra.mxu2 %v4158_v16  ;;  %v2532_v16 = vpop.f32.mrf.mxu1 }
 0x2f1   : > { %2579 = vmatmul.bf16.gmra.mxu1 %v4305_v36 }
 0x2f3   : > { %v4309_v42 = vpop.f32.mrf.mxu2 }
 0x2f4   : > { %4822 = vst [vmem:[#allocation130_spill] sm:$0xff] %v4309_v42  ;;  %v1082_v42 = vld [vmem:[#allocation2 + $0x1d1] sm:$0xff] }
 0x2f5   : > { %v4323_v58 = vpack.c.bf16 %v1082_v42, %v1081_v51 }
 0x2f7   : > { %4827 = vst [vmem:[#allocation135_spill] sm:$0xff] %v4323_v58 }
 0x2f8   : > { %v4327_v28 = vpop.f32.mrf.mxu1 }
 0x2fb   : > { %v4313_v29 = vpop.f32.mrf.mxu2 }
 0x2fc   : > { %4824 = vst [vmem:[#allocation132_spill] sm:$0xff] %v4313_v29  ;;  %v1084_v29 = vld [vmem:[#allocation2 + $0x1f1] sm:$0xff] }
 0x2fd   : > { %v4335_v7 = vpack.c.bf16 %v1084_v29, %v1083_v31 }
 0x300   : > { %2277 = vmatmul.bf16.gmra.mxu2 %v4175_v45 }
 0x301   : > { %2584 = vmatmul.bf16.gmra.mxu1 %v4315_v1 }
 0x303   : > { %v4319_v41 = vpop.f32.mrf.mxu2 }
 0x304   : > { %4825 = vst [vmem:[#allocation133_spill] sm:$0xff] %v4319_v41  ;;  %v4333_v41 = vpop.f32.mrf.mxu1 }
 0x30b   : > { %v4321_v6 = vpop.f32.mrf.mxu2 }
 0x30c   : > { %4826 = vst [vmem:[#allocation134_spill] sm:$0xff] %v4321_v6  ;;  %v1085_v6 = vld [vmem:[#allocation2 + $0x209] sm:$0xff] }
 0x310   : > { %2282 = vmatmul.bf16.gmra.mxu2 %v4197_v44  ;;  %v4341_v44 = vpop.f32.mrf.mxu1 }
 0x311   : > { %2589 = vmatmul.bf16.gmra.mxu1 %v4323_v58 }
 0x313   : > { %v4329_v19 = vpop.f32.mrf.mxu2 }
 0x314   : > { %4828 = vst [vmem:[#allocation136_spill] sm:$0xff] %v4329_v19  ;;  %v1086_v19 = vld [vmem:[#allocation2 + $0x211] sm:$0xff] }
 0x315   : > { %v4345_v58 = vpack.c.bf16 %v1086_v19, %v1085_v6 }
 0x317   : > { %4832 = vst [vmem:[#allocation140_spill] sm:$0xff] %v4345_v58 }
 0x31b   : > { %v4331_v45 = vpop.f32.mrf.mxu2 }
 0x31c   : > { %4829 = vst [vmem:[#allocation137_spill] sm:$0xff] %v4331_v45  ;;  %v4348_v45 = vpop.f32.mrf.mxu1 }
 0x320   : > { %2287 = vmatmul.bf16.gmra.mxu2 %v4215_v4 }
 0x321   : > { %2594 = vmatmul.bf16.gmra.mxu1 %v4335_v7 }
 0x323   : > { %v4339_v51 = vpop.f32.mrf.mxu2 }
 0x324   : > { %4830 = vst [vmem:[#allocation138_spill] sm:$0xff] %v4339_v51 }
 0x32b   : > { %v4343_v42 = vpop.f32.mrf.mxu2 }
 0x32c   : > { %4831 = vst [vmem:[#allocation139_spill] sm:$0xff] %v4343_v42  ;;  %v1908_v42 = vadd.f32 %v4146_v12, %v3852_v23  ;;  %v1913_v23 = vadd.f32 %v4165_v30, %v3873_v46 }
 0x32e   : > { %v1997_v6 = vadd.f32 %v3862_v32, %v1908_v42 }
 0x330   : > { %2292 = vmatmul.bf16.gmra.mxu2 %v4235_v34  ;;  %v1910_v34 = vadd.f32 %v4152_v15, %v3867_v11  ;;  %v2086_v51 = vadd.f32 %v3875_v47, %v1997_v6  ;;  %v4375_v15 = vpop.f32.mrf.mxu0 }
 0x331   : > { %2599 = vmatmul.bf16.gmra.mxu1 %v4345_v58  ;;  %v4369_v58 = vpop.f32.mrf.mxu3 }
 0x333   : > { %v4351_v29 = vpop.f32.mrf.mxu2 }
 0x334   : > { %4833 = vst [vmem:[#allocation141_spill] sm:$0xff] %v4351_v29 }
 0x33b   : > { %v4353_v4 = vpop.f32.mrf.mxu2 }
 0x33c   : > { %4834 = vst [vmem:[#allocation142_spill] sm:$0xff] %v4353_v4  ;;  %v1999_v4 = vadd.f32 %v3869_v37, %v1910_v34  ;;  %v2002_v37 = vadd.f32 %v3880_v48, %v1913_v23 }
 0x33e   : > { %v2088_v11 = vadd.f32 %v3884_v50, %v1999_v4  ;;  %v1915_v50 = vadd.f32 %v4173_v56, %v3882_v49  ;;  %v2091_v30 = vadd.f32 %v3890_v60, %v2002_v37  ;;  %v1918_v60 = vadd.f32 %v4185_v3, %v3888_v59 }
 0x340   : > { %2297 = vmatmul.bf16.gmra.mxu2 %v4256_v18  ;;  %v2175_v18 = vadd.f32 %v3992_v57, %v2086_v51  ;;  %v2177_v12 = vadd.f32 %v4005_v8, %v2088_v11  ;;  %v4395_v8 = vpop.f32.mrf.mxu0 }
 0x343   : > { %v4356_v31 = vpop.f32.mrf.mxu2 }
 0x344   : > { %4835 = vst [vmem:[#allocation143_spill] sm:$0xff] %v4356_v31 }
 0x348   : > { %v4412_v6 = vpop.f32.mrf.mxu0 }
 0x34b   : > { %v4361_v19 = vpop.f32.mrf.mxu2 }
 0x350   : > { %2302 = vmatmul.bf16.gmra.mxu2 %v4271_v27  ;;  %v4378_v27 = vpop.f32.mrf.mxu1 }
 0x353   : > { %v2263_v31 = vpop.f32.mrf.mxu2 }
 0x354   : > { %v2264_v29 = vadd.f32 %v2263_v31, %v2175_v18 }
 0x356   : > { %v2353_v32 = vadd.f32 %v4195_v43, %v2264_v29  ;;  %v4391_v43 = vpop.f32.mrf.mxu3  ;;  %v2180_v29 = vadd.f32 %v4013_v35, %v2091_v30 }
 0x358   : > { %v2442_v47 = vadd.f32 %v4213_v61, %v2353_v32  ;;  %v4399_v4 = vpop.f32.mrf.mxu1 }
 0x35a   : > { %v2531_v57 = vadd.f32 %v2530_v20, %v2442_v47  ;;  %v2004_v20 = vadd.f32 %v3886_v53, %v1915_v50  ;;  %v2007_v53 = vadd.f32 %v3897_v63, %v1918_v60  ;;  %v4837_v47 = vld [vmem:[#allocation51_spill] sm:$0xff]  ;;  %v4841_v50 = vld [vmem:[#allocation16_spill] sm:$0xff] }
 0x35b   : > { %v2265_v51 = vpop.f32.mrf.mxu2 }
 0x35c   : > { %2610 = vst [vmem:[%s4384_s20] sm:$0xff] %v2531_v57  ;;  %v2266_v46 = vadd.f32 %v2265_v51, %v2177_v12 }
 0x35e   : > { %v2355_v61 = vadd.f32 %v4209_v62, %v2266_v46  ;;  %v4407_v31 = vpop.f32.mrf.mxu3 }
 0x360   : > { %v2444_v48 = vadd.f32 %v4227_v54, %v2355_v61  ;;  %2307 = vmatmul.bf16.gmra.mxu2 %v4284_v26  ;;  %v2093_v54 = vadd.f32 %v3901_v2, %v2004_v20  ;;  %v4415_v3 = vpop.f32.mrf.mxu1  ;;  %v1920_v2 = vadd.f32 %v4191_v39, %v3899_v0  ;;  %v4429_v39 = vpop.f32.mrf.mxu0 }
 0x362   : > { %v2533_v42 = vadd.f32 %v2532_v16, %v2444_v48  ;;  %v2182_v16 = vadd.f32 %v4022_v21, %v2093_v54  ;;  %v2009_v21 = vadd.f32 %v3903_v5, %v1920_v2  ;;  %v4842_v48 = vld [vmem:[#allocation14_spill] sm:$0xff]  ;;  %v4845_v54 = vld [vmem:[#allocation108_spill] sm:$0xff] }
 0x363   : > { %v2268_v49 = vpop.f32.mrf.mxu2 }
 0x364   : > { %2611 = vst [vmem:[%s4384_s20 + $0x8] sm:$0xff] %v2533_v42  ;;  %v2269_v56 = vadd.f32 %v2268_v49, %v2180_v29  ;;  %v4843_v29 = vld [vmem:[#allocation55_spill] sm:$0xff] }
 0x366   : > { %v2358_v62 = vadd.f32 %v4223_v9, %v2269_v56  ;;  %v4426_v23 = vpop.f32.mrf.mxu3 }
 0x368   : > { %v2447_v26 = vadd.f32 %v4241_v10, %v2358_v62  ;;  %v2096_v10 = vadd.f32 %v3907_v14, %v2007_v53  ;;  %v1923_v14 = vadd.f32 %v4203_v17, %v3905_v13  ;;  %v4435_v5 = vpop.f32.mrf.mxu1  ;;  %v4838_v13 = vld [vmem:[#allocation13_spill] sm:$0xff]  ;;  %v4839_v17 = vld [vmem:[#allocation106_spill] sm:$0xff]  ;;  %v4844_v62 = vld [vmem:[#allocation15_spill] sm:$0xff] }
 0x36a   : > { %v2536_v35 = vadd.f32 %v4327_v28, %v2447_v26  ;;  %v2185_v18 = vadd.f32 %v4028_v52, %v2096_v10  ;;  %v1928_v26 = vadd.f32 %v4845_v54, %v4844_v62  ;;  %v4860_v62 = vld [vmem:[#allocation113_spill] sm:$0xff] }
 0x36b   : > { %v2270_v34 = vpop.f32.mrf.mxu2 }
 0x36c   : > { %2612 = vst [vmem:[%s4384_s20 + $0x10] sm:$0xff] %v2536_v35  ;;  %v2271_v59 = vadd.f32 %v2270_v34, %v2182_v16 }
 0x36e   : > { %v2360_v9 = vadd.f32 %v4233_v40, %v2271_v59  ;;  %v4442_v51 = vpop.f32.mrf.mxu3 }
 0x370   : > { %v2449_v63 = vadd.f32 %v4251_v24, %v2360_v9  ;;  %2312 = vmatmul.bf16.gmra.mxu2 %v4293_v33  ;;  %v2098_v33 = vadd.f32 %v3918_v22, %v2009_v21  ;;  %v4840_v22 = vld [vmem:[#allocation115_spill] sm:$0xff] }
 0x371   : > { %v4848_v9 = vld [vmem:[#allocation59_spill] sm:$0xff] }
 0x372   : > { %v2538_v28 = vadd.f32 %v4333_v41, %v2449_v63  ;;  %v4836_v41 = vld [vmem:[#allocation12_spill] sm:$0xff]  ;;  %v2187_v37 = vadd.f32 %v4837_v47, %v2098_v33 }
 0x373   : > { %v2273_v32 = vpop.f32.mrf.mxu2  ;;  %v2012_v52 = vadd.f32 %v4836_v41, %v1923_v14  ;;  %v4852_v33 = vld [vmem:[#allocation20_spill] sm:$0xff] }
 0x374   : > { %2613 = vst [vmem:[%s4384_s20 + $0x18] sm:$0xff] %v2538_v28  ;;  %v2274_v0 = vadd.f32 %v2273_v32, %v2185_v18  ;;  %v4849_v28 = vld [vmem:[#allocation18_spill] sm:$0xff] }
 0x375   : > { %v2101_v61 = vadd.f32 %v4841_v50, %v2012_v52  ;;  %v4850_v18 = vld [vmem:[#allocation110_spill] sm:$0xff] }
 0x376   : > { %v2363_v40 = vadd.f32 %v4247_v38, %v2274_v0  ;;  %v1925_v38 = vadd.f32 %v4839_v17, %v4838_v13  ;;  %v1930_v32 = vadd.f32 %v4850_v18, %v4849_v28  ;;  %v4853_v52 = vld [vmem:[#allocation62_spill] sm:$0xff]  ;;  %v4856_v17 = vld [vmem:[#allocation25_spill] sm:$0xff] }
 0x377   : > { %v2190_v49 = vadd.f32 %v4843_v29, %v2101_v61  ;;  %v4858_v61 = vld [vmem:[#allocation66_spill] sm:$0xff]  ;;  %v4865_v18 = vld [vmem:[#allocation37_spill] sm:$0xff] }
 0x378   : > { %v2452_v24 = vadd.f32 %v4265_v55, %v2363_v40  ;;  %v4448_v55 = vpop.f32.mrf.mxu0  ;;  %v2014_v20 = vadd.f32 %v4842_v48, %v1925_v38  ;;  %v1023_v48 = vld [vmem:[#allocation2 + $0x227] sm:$0xff]  ;;  %v1088_v28 = vld [vmem:[#allocation2 + $0x231] sm:$0xff]  ;;  %2515 = vmatmul.bf16.gmra.mxu0 %v4865_v18 }
 0x37a   : > { %v2541_v11 = vadd.f32 %v4341_v44, %v2452_v24  ;;  %v4452_v44 = vpop.f32.mrf.mxu1  ;;  %v2019_v24 = vadd.f32 %v4852_v33, %v1930_v32 }
 0x37b   : > { %v2275_v57 = vpop.f32.mrf.mxu2 }
 0x37c   : > { %2614 = vst [vmem:[%s4384_s20 + $0x20] sm:$0xff] %v2541_v11  ;;  %v2276_v12 = vadd.f32 %v2275_v57, %v2187_v37  ;;  %v2108_v38 = vadd.f32 %v4856_v17, %v2019_v24  ;;  %v4872_v17 = vld [vmem:[#allocation118_spill] sm:$0xff] }
 0x37e   : > { %v2365_v46 = vadd.f32 %v4840_v22, %v2276_v12  ;;  %v4854_v12 = vld [vmem:[#allocation21_spill] sm:$0xff] }
 0x380   : > { %v2454_v30 = vadd.f32 %v4273_v25, %v2365_v46  ;;  %2317 = vmatmul.bf16.gmra.mxu2 %v4305_v36  ;;  %v4846_v25 = vld [vmem:[#allocation19_spill] sm:$0xff]  ;;  %v4462_v36 = vpop.f32.mrf.mxu3  ;;  %v4465_v34 = vpop.f32.mrf.mxu0 }
 0x381   : > { %v2103_v35 = vadd.f32 %v4846_v25, %v2014_v20  ;;  %v1024_v20 = vld [vmem:[#allocation2 + $0x22f] sm:$0xff] }
 0x382   : > { %v2543_v42 = vadd.f32 %v4348_v45, %v2454_v30  ;;  %v4847_v45 = vld [vmem:[#allocation17_spill] sm:$0xff]  ;;  %v4470_v63 = vpop.f32.mrf.mxu1  ;;  %v2197_v30 = vadd.f32 %v4858_v61, %v2108_v38 }
 0x383   : > { %v2278_v56 = vpop.f32.mrf.mxu2  ;;  %v2017_v59 = vadd.f32 %v4847_v45, %v1928_v26  ;;  %v2192_v10 = vadd.f32 %v4848_v9, %v2103_v35  ;;  %v4861_v26 = vld [vmem:[#allocation28_spill] sm:$0xff]  ;;  %v4862_v35 = vld [vmem:[#allocation135_spill] sm:$0xff] }
 0x384   : > { %2615 = vst [vmem:[%s4384_s20 + $0x28] sm:$0xff] %v2543_v42  ;;  %v2279_v60 = vadd.f32 %v2278_v56, %v2190_v49  ;;  %v1230_v49 = vpack.c.bf16 %v1024_v20, %v1023_v48  ;;  %v4875_v48 = vld [vmem:[#allocation79_spill] sm:$0xff] }
 0x386   : > { %v2368_v53 = vadd.f32 %v4369_v58, %v2279_v60  ;;  %2426 = vmatmul.bf16.gmra.mxu3 %v1230_v49  ;;  %v4859_v60 = vld [vmem:[#allocation24_spill] sm:$0xff] }
 0x388   : > { %v2457_v16 = vadd.f32 %v4375_v15, %v2368_v53  ;;  %v4851_v15 = vld [vmem:[#allocation22_spill] sm:$0xff]  ;;  %v4484_v47 = vpop.f32.mrf.mxu0 }
 0x389   : > { %v2106_v14 = vadd.f32 %v4851_v15, %v2017_v59 }
 0x38a   : > { %v2546_v2 = vadd.f32 %v4378_v27, %v2457_v16  ;;  %v4479_v27 = vpop.f32.mrf.mxu3  ;;  %v4487_v57 = vpop.f32.mrf.mxu1  ;;  %v4863_v16 = vld [vmem:[#allocation26_spill] sm:$0xff] }
 0x38b   : > { %v2280_v21 = vpop.f32.mrf.mxu2  ;;  %v2195_v11 = vadd.f32 %v4853_v52, %v2106_v14  ;;  %v4869_v52 = vld [vmem:[#allocation30_spill] sm:$0xff] }
 0x38c   : > { %2616 = vst [vmem:[%s4384_s20 + $0x30] sm:$0xff] %v2546_v2  ;;  %v2281_v58 = vadd.f32 %v2280_v21, %v2192_v10  ;;  %v4864_v2 = vld [vmem:[#allocation70_spill] sm:$0xff] }
 0x38e   : > { %v2370_v0 = vadd.f32 %v4391_v43, %v2281_v58  ;;  %v1087_v58 = vld [vmem:[#allocation2 + $0x229] sm:$0xff] }
 0x38f   : > { %v1232_v32 = vpack.c.bf16 %v1088_v28, %v1087_v58  ;;  %v4883_v28 = vld [vmem:[#allocation41_spill] sm:$0xff] }
 0x390   : > { %v2459_v40 = vadd.f32 %v4395_v8, %v2370_v0  ;;  %2322 = vmatmul.bf16.gmra.mxu2 %v4315_v1  ;;  %v4855_v8 = vld [vmem:[#allocation111_spill] sm:$0xff] }
 0x391   : > { %v1933_v13 = vadd.f32 %v4855_v8, %v4854_v12  ;;  %v4866_v0 = vld [vmem:[#allocation27_spill] sm:$0xff]  ;;  %2604 = vmatmul.bf16.gmra.mxu1 %v1232_v32  ;;  %v4884_v32 = vld [vmem:[#allocation140_spill] sm:$0xff] }
 0x392   : > { %v2548_v41 = vadd.f32 %v4399_v4, %v2459_v40  ;;  %v4857_v4 = vld [vmem:[#allocation23_spill] sm:$0xff]  ;;  %v4497_v42 = vpop.f32.mrf.mxu3  ;;  %v2562_v53 = vpop.f32.mrf.mxu1 }
 0x393   : > { %v2283_v37 = vpop.f32.mrf.mxu2  ;;  %v2022_v46 = vadd.f32 %v4857_v4, %v1933_v13  ;;  %v4868_v40 = vld [vmem:[#allocation31_spill] sm:$0xff] }
 0x394   : > { %2617 = vst [vmem:[%s4384_s20 + $0x38] sm:$0xff] %v2548_v41  ;;  %v2284_v43 = vadd.f32 %v2283_v37, %v2195_v11 }
 0x396   : > { %v2373_v1 = vadd.f32 %v4407_v31, %v2284_v43  ;;  %v2473_v31 = vpop.f32.mrf.mxu0  ;;  %v4870_v43 = vld [vmem:[#allocation75_spill] sm:$0xff] }
 0x398   : > { %v2462_v22 = vadd.f32 %v4412_v6, %v2373_v1  ;;  %v1935_v6 = vadd.f32 %v4860_v62, %v4859_v60  ;;  %v4871_v1 = vld [vmem:[#allocation29_spill] sm:$0xff]  ;;  %v4877_v60 = vld [vmem:[#allocation120_spill] sm:$0xff] }
 0x39a   : > { %v2551_v50 = vadd.f32 %v4415_v3, %v2462_v22  ;;  %v2111_v3 = vadd.f32 %v4861_v26, %v2022_v46  ;;  %v2024_v45 = vadd.f32 %v4863_v16, %v1935_v6  ;;  %v2565_v41 = vpop.f32.mrf.mxu1  ;;  %v4873_v22 = vld [vmem:[#allocation35_spill] sm:$0xff] }
 0x39b   : > { %v2285_v29 = vpop.f32.mrf.mxu2 }
 0x39c   : > { %2618 = vst [vmem:[%s4384_s20 + $0x40] sm:$0xff] %v2551_v50  ;;  %v2286_v56 = vadd.f32 %v2285_v29, %v2197_v30  ;;  %v2200_v9 = vadd.f32 %v4864_v2, %v2111_v3  ;;  %v2113_v33 = vadd.f32 %v4868_v40, %v2024_v45  ;;  %v4879_v3 = vld [vmem:[#allocation36_spill] sm:$0xff] }
 0x39e   : > { %v2375_v54 = vadd.f32 %v4426_v23, %v2286_v56  ;;  %v2387_v23 = vpop.f32.mrf.mxu3  ;;  %v2202_v12 = vadd.f32 %v4870_v43, %v2113_v33 }
 0x3a0   : > { %v2464_v25 = vadd.f32 %v4429_v39, %v2375_v54  ;;  %2327 = vmatmul.bf16.gmra.mxu2 %v4862_v35  ;;  %v4867_v39 = vld [vmem:[#allocation116_spill] sm:$0xff]  ;;  %v4880_v35 = vld [vmem:[#allocation83_spill] sm:$0xff] }
 0x3a1   : > { %v1938_v15 = vadd.f32 %v4867_v39, %v4866_v0  ;;  %v4885_v0 = vld [vmem:[#allocation40_spill] sm:$0xff] }
 0x3a2   : > { %v2553_v59 = vadd.f32 %v4435_v5, %v2464_v25  ;;  %v2476_v5 = vpop.f32.mrf.mxu0  ;;  %v2567_v29 = vpop.f32.mrf.mxu1 }
 0x3a3   : > { %v2288_v10 = vpop.f32.mrf.mxu2  ;;  %v2027_v11 = vadd.f32 %v4869_v52, %v1938_v15  ;;  %v4886_v15 = vld [vmem:[#allocation87_spill] sm:$0xff] }
 0x3a4   : > { %2619 = vst [vmem:[%s4384_s20 + $0x48] sm:$0xff] %v2553_v59  ;;  %v2289_v21 = vadd.f32 %v2288_v10, %v2200_v9  ;;  %v4881_v10 = vld [vmem:[#allocation34_spill] sm:$0xff] }
 0x3a5   : > { %v2116_v4 = vadd.f32 %v4873_v22, %v2027_v11  ;;  %v4887_v11 = vld [vmem:[#allocation39_spill] sm:$0xff] }
 0x3a6   : > { %v2378_v14 = vadd.f32 %v4442_v51, %v2289_v21  ;;  %v1940_v51 = vadd.f32 %v4872_v17, %v4871_v1  ;;  %v2389_v46 = vpop.f32.mrf.mxu3  ;;  %v4882_v21 = vld [vmem:[#allocation121_spill] sm:$0xff]  ;;  %v4890_v1 = vld [vmem:[#allocation43_spill] sm:$0xff] }
 0x3a7   : > { %v2205_v20 = vadd.f32 %v4875_v48, %v2116_v4 }
 0x3a8   : > { %v2467_v24 = vadd.f32 %v4448_v55, %v2378_v14 }
 0x3aa   : > { %v2556_v37 = vadd.f32 %v4452_v44, %v2467_v24  ;;  %v2478_v50 = vpop.f32.mrf.mxu0  ;;  %v4874_v44 = vld [vmem:[#allocation33_spill] sm:$0xff]  ;;  %v2570_v9 = vpop.f32.mrf.mxu1 }
 0x3ab   : > { %v2290_v8 = vpop.f32.mrf.mxu2  ;;  %v2029_v61 = vadd.f32 %v4874_v44, %v1940_v51  ;;  %v4892_v44 = vld [vmem:[#allocation42_spill] sm:$0xff] }
 0x3ac   : > { %2620 = vst [vmem:[%s4384_s20 + $0x50] sm:$0xff] %v2556_v37  ;;  %v2291_v13 = vadd.f32 %v2290_v8, %v2202_v12  ;;  %v4888_v37 = vld [vmem:[#allocation123_spill] sm:$0xff]  ;;  %v4889_v12 = vld [vmem:[#allocation45_spill] sm:$0xff] }
 0x3ad   : > { %v1948_v43 = vadd.f32 %v4888_v37, %v4887_v11  ;;  %v4906_v11 = vld [vmem:[#allocation100_spill] sm:$0xff] }
 0x3ae   : > { %v2380_v38 = vadd.f32 %v4462_v36, %v2291_v13  ;;  %v4876_v36 = vld [vmem:[#allocation32_spill] sm:$0xff]  ;;  %v2392_v26 = vpop.f32.mrf.mxu3 }
 0x3af   : > { %v1943_v62 = vadd.f32 %v4877_v60, %v4876_v36  ;;  %v2037_v17 = vadd.f32 %v4890_v1, %v1948_v43 }
 0x3b0   : > { %v2469_v55 = vadd.f32 %v4465_v34, %v2380_v38  ;;  %2332 = vmatmul.bf16.gmra.mxu2 %v4335_v7  ;;  %v4878_v34 = vld [vmem:[#allocation38_spill] sm:$0xff] }
 0x3b1   : > { %v2118_v54 = vadd.f32 %v4878_v34, %v2029_v61  ;;  %v2032_v25 = vadd.f32 %v4879_v3, %v1943_v62  ;;  %v4893_v61 = vld [vmem:[#allocation125_spill] sm:$0xff]  ;;  %v4898_v3 = vld [vmem:[#allocation127_spill] sm:$0xff] }
 0x3b2   : > { %v2558_v30 = vadd.f32 %v4470_v63, %v2469_v55  ;;  %v2481_v45 = vpop.f32.mrf.mxu0 }
 0x3b3   : > { %v2293_v49 = vpop.f32.mrf.mxu2  ;;  %v2207_v16 = vadd.f32 %v4880_v35, %v2118_v54  ;;  %v4899_v35 = vld [vmem:[#allocation52_spill] sm:$0xff] }
 0x3b4   : > { %2621 = vst [vmem:[%s4384_s20 + $0x58] sm:$0xff] %v2558_v30  ;;  %v2294_v56 = vadd.f32 %v2293_v49, %v2205_v20  ;;  %v1950_v30 = vadd.f32 %v4893_v61, %v4892_v44  ;;  %v4894_v20 = vld [vmem:[#allocation48_spill] sm:$0xff] }
 0x3b6   : > { %v2383_v6 = vadd.f32 %v4479_v27, %v2294_v56  ;;  %v1945_v27 = vadd.f32 %v4882_v21, %v4881_v10  ;;  %v2394_v40 = vpop.f32.mrf.mxu3 }
 0x3b8   : > { %v2472_v7 = vadd.f32 %v4484_v47, %v2383_v6  ;;  %v2121_v47 = vadd.f32 %v4883_v28, %v2032_v25 }
 0x3ba   : > { %v2561_v63 = vadd.f32 %v4487_v57, %v2472_v7  ;;  %v2034_v57 = vadd.f32 %v4885_v0, %v1945_v27  ;;  %v2210_v14 = vadd.f32 %v4886_v15, %v2121_v47  ;;  %v2483_v52 = vpop.f32.mrf.mxu0  ;;  %v4897_v7 = vld [vmem:[#allocation44_spill] sm:$0xff]  ;;  %v4901_v27 = vld [vmem:[#allocation97_spill] sm:$0xff] }
 0x3bb   : > { %v2295_v59 = vpop.f32.mrf.mxu2  ;;  %v1953_v25 = vadd.f32 %v4898_v3, %v4897_v7 }
 0x3bc   : > { %2622 = vst [vmem:[%s4384_s20 + $0x60] sm:$0xff] %v2561_v63  ;;  %v2296_v2 = vadd.f32 %v2295_v59, %v2207_v16  ;;  %v2123_v8 = vadd.f32 %v4889_v12, %v2034_v57 }
 0x3be   : > { %v2385_v58 = vadd.f32 %v4497_v42, %v2296_v2  ;;  %v2397_v55 = vpop.f32.mrf.mxu3 }
 0x3c0   : > { %v2474_v18 = vadd.f32 %v2473_v31, %v2385_v58  ;;  %2337 = vmatmul.bf16.gmra.mxu2 %v4884_v32  ;;  %v2572_v31 = vpop.f32.mrf.mxu1  ;;  %v4903_v32 = vld [vmem:[#allocation129_spill] sm:$0xff] }
 0x3c2   : > { %v2563_v39 = vadd.f32 %v2562_v53, %v2474_v18  ;;  %v4891_v53 = vld [vmem:[#allocation91_spill] sm:$0xff]  ;;  %v2486_v49 = vpop.f32.mrf.mxu0 }
 0x3c3   : > { %v2298_v33 = vpop.f32.mrf.mxu2  ;;  %v2212_v38 = vadd.f32 %v4891_v53, %v2123_v8  ;;  %v4902_v18 = vld [vmem:[#allocation47_spill] sm:$0xff]  ;;  %v4907_v8 = vld [vmem:[#allocation50_spill] sm:$0xff] }
 0x3c4   : > { %2623 = vst [vmem:[%s4384_s20 + $0x68] sm:$0xff] %v2563_v39  ;;  %v2299_v24 = vadd.f32 %v2298_v33, %v2210_v14  ;;  %v1955_v0 = vadd.f32 %v4903_v32, %v4902_v18 }
 0x3c6   : > { %v2388_v42 = vadd.f32 %v2387_v23, %v2299_v24  ;;  %v2126_v23 = vadd.f32 %v4894_v20, %v2037_v17  ;;  %v2399_v16 = vpop.f32.mrf.mxu3  ;;  %v4912_v20 = vld [vmem:[#allocation53_spill] sm:$0xff] }
 0x3c8   : > { %v2477_v13 = vadd.f32 %v2476_v5, %v2388_v42  ;;  %v2575_v36 = vpop.f32.mrf.mxu1  ;;  %v4895_v5 = vld [vmem:[#allocation46_spill] sm:$0xff] }
 0x3c9   : > { %v2039_v60 = vadd.f32 %v4895_v5, %v1950_v30 }
 0x3ca   : > { %v2566_v51 = vadd.f32 %v2565_v41, %v2477_v13  ;;  %v4896_v41 = vld [vmem:[#allocation94_spill] sm:$0xff]  ;;  %v2488_v2 = vpop.f32.mrf.mxu0 }
 0x3cb   : > { %v2300_v22 = vpop.f32.mrf.mxu2  ;;  %v2215_v6 = vadd.f32 %v4896_v41, %v2126_v23  ;;  %v4908_v13 = vld [vmem:[#allocation130_spill] sm:$0xff]  ;;  %v4913_v23 = vld [vmem:[#allocation132_spill] sm:$0xff] }
 0x3cc   : > { %2624 = vst [vmem:[%s4384_s20 + $0x70] sm:$0xff] %v2566_v51  ;;  %v2301_v4 = vadd.f32 %v2300_v22, %v2212_v38  ;;  %v1958_v1 = vadd.f32 %v4908_v13, %v4907_v8 }
 0x3ce   : > { %v2390_v48 = vadd.f32 %v2389_v46, %v2301_v4  ;;  %v2128_v46 = vadd.f32 %v4899_v35, %v2039_v60  ;;  %v2402_v14 = vpop.f32.mrf.mxu3  ;;  %v4911_v4 = vld [vmem:[#allocation103_spill] sm:$0xff]  ;;  %v4914_v60 = vld [vmem:[#allocation65_spill] sm:$0xff] }
 0x3cf   : > { %v4918_v35 = vld [vmem:[#allocation133_spill] sm:$0xff] }
 0x3d0   : > { %v2479_v56 = vadd.f32 %v2478_v50, %v2390_v48  ;;  %v4900_v50 = vld [vmem:[#allocation49_spill] sm:$0xff]  ;;  %v2577_v58 = vpop.f32.mrf.mxu1 }
 0x3d1   : > { %v2042_v10 = vadd.f32 %v4900_v50, %v1953_v25  ;;  %v4919_v50 = vld [vmem:[#allocation69_spill] sm:$0xff] }
 0x3d2   : > { %v2568_v62 = vadd.f32 %v2567_v29, %v2479_v56  ;;  %v2217_v29 = vadd.f32 %v4901_v27, %v2128_v46  ;;  %v2491_v37 = vpop.f32.mrf.mxu0  ;;  %v1960_v56 = vadd.f32 %v4913_v23, %v4912_v20 }
 0x3d3   : > { %v2303_v34 = vpop.f32.mrf.mxu2 }
 0x3d4   : > { %2625 = vst [vmem:[%s4384_s20 + $0x78] sm:$0xff] %v2568_v62  ;;  %v2304_v54 = vadd.f32 %v2303_v34, %v2215_v6 }
 0x3d6   : > { %v2393_v63 = vadd.f32 %v2392_v26, %v2304_v54  ;;  %v4904_v26 = vld [vmem:[#allocation56_spill] sm:$0xff]  ;;  %v2404_v44 = vpop.f32.mrf.mxu3 }
 0x3d7   : > { %v2131_v39 = vadd.f32 %v4904_v26, %v2042_v10 }
 0x3d8   : > { %v2482_v59 = vadd.f32 %v2481_v45, %v2393_v63  ;;  %v4905_v45 = vld [vmem:[#allocation54_spill] sm:$0xff]  ;;  %v2580_v12 = vpop.f32.mrf.mxu1  ;;  %v4917_v63 = vld [vmem:[#allocation57_spill] sm:$0xff] }
 0x3d9   : > { %v2044_v33 = vadd.f32 %v4905_v45, %v1955_v0  ;;  %v1963_v46 = vadd.f32 %v4918_v35, %v4917_v63  ;;  %v4922_v0 = vld [vmem:[#allocation60_spill] sm:$0xff] }
 0x3da   : > { %v2571_v21 = vadd.f32 %v2570_v9, %v2482_v59  ;;  %v2220_v9 = vadd.f32 %v4906_v11, %v2131_v39  ;;  %v2493_v48 = vpop.f32.mrf.mxu0  ;;  %v4925_v11 = vld [vmem:[#allocation72_spill] sm:$0xff] }
 0x3db   : > { %v2305_v28 = vpop.f32.mrf.mxu2 }
 0x3dc   : > { %2626 = vst [vmem:[%s4384_s20 + $0x80] sm:$0xff] %v2571_v21  ;;  %v2306_v47 = vadd.f32 %v2305_v28, %v2217_v29 }
 0x3de   : > { %v2395_v57 = vadd.f32 %v2394_v40, %v2306_v47  ;;  %v4909_v40 = vld [vmem:[#allocation61_spill] sm:$0xff]  ;;  %v2407_v25 = vpop.f32.mrf.mxu3 }
 0x3df   : > { %v2133_v51 = vadd.f32 %v4909_v40, %v2044_v33 }
 0x3e0   : > { %v2484_v15 = vadd.f32 %v2483_v52, %v2395_v57  ;;  %v4910_v52 = vld [vmem:[#allocation58_spill] sm:$0xff]  ;;  %v2582_v62 = vpop.f32.mrf.mxu1 }
 0x3e1   : > { %v2047_v38 = vadd.f32 %v4910_v52, %v1958_v1  ;;  %v4923_v57 = vld [vmem:[#allocation134_spill] sm:$0xff]  ;;  %v4927_v1 = vld [vmem:[#allocation64_spill] sm:$0xff] }
 0x3e2   : > { %v2573_v24 = vadd.f32 %v2572_v31, %v2484_v15  ;;  %v2222_v31 = vadd.f32 %v4911_v4, %v2133_v51  ;;  %v2496_v10 = vpop.f32.mrf.mxu0  ;;  %v1965_v26 = vadd.f32 %v4923_v57, %v4922_v0  ;;  %v4924_v15 = vld [vmem:[#allocation73_spill] sm:$0xff]  ;;  %v4930_v4 = vld [vmem:[#allocation76_spill] sm:$0xff] }
 0x3e3   : > { %v2308_v43 = vpop.f32.mrf.mxu2 }
 0x3e4   : > { %2627 = vst [vmem:[%s4384_s20 + $0x88] sm:$0xff] %v2573_v24  ;;  %v2309_v42 = vadd.f32 %v2308_v43, %v2220_v9  ;;  %v2054_v9 = vadd.f32 %v4925_v11, %v1965_v26  ;;  %v4926_v43 = vld [vmem:[#allocation109_spill] sm:$0xff] }
 0x3e6   : > { %v2398_v17 = vadd.f32 %v2397_v55, %v2309_v42  ;;  %v2136_v55 = vadd.f32 %v4914_v60, %v2047_v38  ;;  %v2409_v45 = vpop.f32.mrf.mxu3  ;;  %v4933_v60 = vld [vmem:[#allocation137_spill] sm:$0xff] }
 0x3e8   : > { %v2487_v53 = vadd.f32 %v2486_v49, %v2398_v17  ;;  %v4915_v49 = vld [vmem:[#allocation63_spill] sm:$0xff]  ;;  %v2585_v27 = vpop.f32.mrf.mxu1  ;;  %v4928_v17 = vld [vmem:[#allocation136_spill] sm:$0xff] }
 0x3e9   : > { %v2049_v6 = vadd.f32 %v4915_v49, %v1960_v56  ;;  %v1968_v40 = vadd.f32 %v4928_v17, %v4927_v1 }
 0x3ea   : > { %v2576_v22 = vadd.f32 %v2575_v36, %v2487_v53  ;;  %v4916_v36 = vld [vmem:[#allocation105_spill] sm:$0xff]  ;;  %v2498_v24 = vpop.f32.mrf.mxu0  ;;  %v4929_v53 = vld [vmem:[#allocation78_spill] sm:$0xff] }
 0x3eb   : > { %v2310_v61 = vpop.f32.mrf.mxu2  ;;  %v2225_v54 = vadd.f32 %v4916_v36, %v2136_v55  ;;  %v2143_v52 = vadd.f32 %v4929_v53, %v2054_v9 }
 0x3ec   : > { %2628 = vst [vmem:[%s4384_s20 + $0x90] sm:$0xff] %v2576_v22  ;;  %v2311_v30 = vadd.f32 %v2310_v61, %v2222_v31  ;;  %v2057_v31 = vadd.f32 %v4930_v4, %v1968_v40  ;;  %v4931_v61 = vld [vmem:[#allocation112_spill] sm:$0xff]  ;;  %v4947_v40 = vld [vmem:[#allocation77_spill] sm:$0xff] }
 0x3ee   : > { %v2400_v5 = vadd.f32 %v2399_v16, %v2311_v30  ;;  %v2138_v16 = vadd.f32 %v4919_v50, %v2049_v6  ;;  %v2412_v22 = vpop.f32.mrf.mxu3  ;;  %v2232_v30 = vadd.f32 %v4931_v61, %v2143_v52  ;;  %v4938_v50 = vld [vmem:[#allocation138_spill] sm:$0xff]  ;;  %v4950_v61 = vld [vmem:[#allocation92_spill] sm:$0xff] }
 0x3f0   : > { %v2489_v41 = vadd.f32 %v2488_v2, %v2400_v5  ;;  %v4920_v2 = vld [vmem:[#allocation67_spill] sm:$0xff]  ;;  %v4932_v5 = vld [vmem:[#allocation68_spill] sm:$0xff] }
 0x3f1   : > { %v2052_v29 = vadd.f32 %v4920_v2, %v1963_v46  ;;  %v1970_v55 = vadd.f32 %v4933_v60, %v4932_v5 }
 0x3f2   : > { %v2578_v34 = vadd.f32 %v2577_v58, %v2489_v41  ;;  %v4921_v58 = vld [vmem:[#allocation107_spill] sm:$0xff]  ;;  %v4934_v41 = vld [vmem:[#allocation82_spill] sm:$0xff] }
 0x3f3   : > { %v2313_v7 = vpop.f32.mrf.mxu2  ;;  %v2227_v47 = vadd.f32 %v4921_v58, %v2138_v16  ;;  %v2146_v49 = vadd.f32 %v4934_v41, %v2057_v31 }
 0x3f4   : > { %2629 = vst [vmem:[%s4384_s20 + $0x98] sm:$0xff] %v2578_v34  ;;  %v2314_v3 = vadd.f32 %v2313_v7, %v2225_v54  ;;  %v4935_v34 = vld [vmem:[#allocation80_spill] sm:$0xff]  ;;  %v4936_v7 = vld [vmem:[#allocation114_spill] sm:$0xff] }
 0x3f5   : > { %v2059_v36 = vadd.f32 %v4935_v34, %v1970_v55  ;;  %v4952_v55 = vld [vmem:[#allocation81_spill] sm:$0xff] }
 0x3f6   : > { %v2403_v59 = vadd.f32 %v2402_v14, %v2314_v3  ;;  %v2141_v14 = vadd.f32 %v4924_v15, %v2052_v29  ;;  %v2235_v3 = vadd.f32 %v4936_v7, %v2146_v49  ;;  %v4943_v15 = vld [vmem:[#allocation139_spill] sm:$0xff] }
 0x3f7   : > { %v4955_v7 = vld [vmem:[#allocation95_spill] sm:$0xff] }
 0x3f8   : > { %v2492_v21 = vadd.f32 %v2491_v37, %v2403_v59  ;;  %v2230_v42 = vadd.f32 %v4926_v43, %v2141_v14  ;;  %v4937_v59 = vld [vmem:[#allocation71_spill] sm:$0xff]  ;;  %v4945_v43 = vld [vmem:[#allocation89_spill] sm:$0xff] }
 0x3f9   : > { %v1973_v16 = vadd.f32 %v4938_v50, %v4937_v59 }
 0x3fa   : > { %v2581_v28 = vadd.f32 %v2580_v12, %v2492_v21  ;;  %v2587_v12 = vpop.f32.mrf.mxu1  ;;  %v4939_v21 = vld [vmem:[#allocation86_spill] sm:$0xff] }
 0x3fb   : > { %v2315_v18 = vpop.f32.mrf.mxu2 }
 0x3fc   : > { %2630 = vst [vmem:[%s4384_s20 + $0xa0] sm:$0xff] %v2581_v28  ;;  %v2316_v32 = vadd.f32 %v2315_v18, %v2227_v47  ;;  %v4940_v28 = vld [vmem:[#allocation84_spill] sm:$0xff]  ;;  %v4941_v18 = vld [vmem:[#allocation117_spill] sm:$0xff] }
 0x3fd   : > { %v2062_v58 = vadd.f32 %v4940_v28, %v1973_v16 }
 0x3fe   : > { %v2405_v39 = vadd.f32 %v2404_v44, %v2316_v32 }
 0x400   : > { %v2494_v33 = vadd.f32 %v2493_v48, %v2405_v39  ;;  %v2501_v48 = vpop.f32.mrf.mxu0  ;;  %v4942_v39 = vld [vmem:[#allocation74_spill] sm:$0xff] }
 0x401   : > { %v1975_v14 = vadd.f32 %v4943_v15, %v4942_v39 }
 0x402   : > { %v2583_v37 = vadd.f32 %v2582_v62, %v2494_v33  ;;  %v2590_v56 = vpop.f32.mrf.mxu1  ;;  %v4944_v33 = vld [vmem:[#allocation90_spill] sm:$0xff] }
 0x403   : > { %v2318_v8 = vpop.f32.mrf.mxu2 }
 0x404   : > { %2631 = vst [vmem:[%s4384_s20 + $0xa8] sm:$0xff] %v2583_v37  ;;  %v2319_v13 = vadd.f32 %v2318_v8, %v2230_v42  ;;  %v2064_v42 = vadd.f32 %v4945_v43, %v1975_v14  ;;  %v4946_v8 = vld [vmem:[#allocation119_spill] sm:$0xff] }
 0x406   : > { %v2408_v51 = vadd.f32 %v2407_v25, %v2319_v13  ;;  %v2414_v25 = vpop.f32.mrf.mxu3 }
 0x408   : > { %v2497_v38 = vadd.f32 %v2496_v10, %v2408_v51  ;;  %v2503_v46 = vpop.f32.mrf.mxu0  ;;  %v4948_v51 = vld [vmem:[#allocation141_spill] sm:$0xff] }
 0x409   : > { %v1978_v53 = vadd.f32 %v4948_v51, %v4947_v40 }
 0x40a   : > { %v2586_v44 = vadd.f32 %v2585_v27, %v2497_v38  ;;  %v2148_v27 = vadd.f32 %v4939_v21, %v2059_v36  ;;  %v2592_v2 = vpop.f32.mrf.mxu1  ;;  %v4949_v38 = vld [vmem:[#allocation93_spill] sm:$0xff]  ;;  %v4958_v21 = vld [vmem:[#allocation143_spill] sm:$0xff] }
 0x40b   : > { %v2320_v20 = vpop.f32.mrf.mxu2 }
 0x40c   : > { %2632 = vst [vmem:[%s4384_s20 + $0xb0] sm:$0xff] %v2586_v44  ;;  %v2321_v23 = vadd.f32 %v2320_v20, %v2232_v30  ;;  %v2237_v32 = vadd.f32 %v4941_v18, %v2148_v27  ;;  %v2067_v30 = vadd.f32 %v4950_v61, %v1978_v53  ;;  %v4951_v20 = vld [vmem:[#allocation122_spill] sm:$0xff] }
 0x40e   : > { %v2410_v62 = vadd.f32 %v2409_v45, %v2321_v23  ;;  %v2417_v26 = vpop.f32.mrf.mxu3 }
 0x410   : > { %v2499_v6 = vadd.f32 %v2498_v24, %v2410_v62  ;;  %v2151_v24 = vadd.f32 %v4944_v33, %v2062_v58  ;;  %v2506_v11 = vpop.f32.mrf.mxu0  ;;  %v4953_v62 = vld [vmem:[#allocation142_spill] sm:$0xff] }
 0x411   : > { %v1980_v41 = vadd.f32 %v4953_v62, %v4952_v55 }
 0x412   : > { %v2588_v54 = vadd.f32 %v2587_v12, %v2499_v6  ;;  %v2595_v37 = vpop.f32.mrf.mxu1  ;;  %v2240_v13 = vadd.f32 %v4946_v8, %v2151_v24  ;;  %v4954_v6 = vld [vmem:[#allocation96_spill] sm:$0xff] }
 0x413   : > { %v2323_v63 = vpop.f32.mrf.mxu2  ;;  %v2156_v34 = vadd.f32 %v4954_v6, %v2067_v30 }
 0x414   : > { %2633 = vst [vmem:[%s4384_s20 + $0xb8] sm:$0xff] %v2588_v54  ;;  %v2324_v35 = vadd.f32 %v2323_v63, %v2235_v3  ;;  %v2069_v3 = vadd.f32 %v4955_v7, %v1980_v41  ;;  %v4956_v63 = vld [vmem:[#allocation124_spill] sm:$0xff] }
 0x416   : > { %v2413_v10 = vadd.f32 %v2412_v22, %v2324_v35  ;;  %v2153_v22 = vadd.f32 %v4949_v38, %v2064_v42  ;;  %v2419_v4 = vpop.f32.mrf.mxu3  ;;  %v2245_v35 = vadd.f32 %v4956_v63, %v2156_v34  ;;  %v4964_v42 = vld [vmem:[#allocation101_spill] sm:$0xff] }
 0x418   : > { %v2502_v29 = vadd.f32 %v2501_v48, %v2413_v10  ;;  %v2508_v44 = vpop.f32.mrf.mxu0  ;;  %v2242_v23 = vadd.f32 %v4951_v20, %v2153_v22  ;;  %v4957_v10 = vld [vmem:[#allocation85_spill] sm:$0xff] }
 0x419   : > { %v1983_v27 = vadd.f32 %v4958_v21, %v4957_v10 }
 0x41a   : > { %v2591_v47 = vadd.f32 %v2590_v56, %v2502_v29  ;;  %v2597_v56 = vpop.f32.mrf.mxu1  ;;  %v4959_v29 = vld [vmem:[#allocation99_spill] sm:$0xff] }
 0x41b   : > { %v2325_v0 = vpop.f32.mrf.mxu2  ;;  %v2158_v28 = vadd.f32 %v4959_v29, %v2069_v3 }
 0x41c   : > { %2634 = vst [vmem:[%s4384_s20 + $0xc0] sm:$0xff] %v2591_v47  ;;  %v2326_v57 = vadd.f32 %v2325_v0, %v2237_v32  ;;  %v4960_v47 = vld [vmem:[#allocation98_spill] sm:$0xff] }
 0x41d   : > { %v2072_v18 = vadd.f32 %v4960_v47, %v1983_v27  ;;  %v4961_v0 = vld [vmem:[#allocation126_spill] sm:$0xff] }
 0x41e   : > { %v2415_v45 = vadd.f32 %v2414_v25, %v2326_v57  ;;  %v2422_v54 = vpop.f32.mrf.mxu3  ;;  %v2247_v57 = vadd.f32 %v4961_v0, %v2158_v28 }
 0x420   : > { %v2504_v9 = vadd.f32 %v2503_v46, %v2415_v45  ;;  %v2511_v46 = vpop.f32.mrf.mxu0  ;;  %v4962_v45 = vld [vmem:[#allocation88_spill] sm:$0xff] }
 0x421   : > { %v1985_v33 = vadd.f32 %v4361_v19, %v4962_v45  ;;  %v4966_v19 = vld [vmem:[#allocation104_spill] sm:$0xff] }
 0x422   : > { %v2593_v12 = vadd.f32 %v2592_v2, %v2504_v9  ;;  %v2600_v16 = vpop.f32.mrf.mxu1 }
 0x423   : > { %v2328_v1 = vpop.f32.mrf.mxu2 }
 0x424   : > { %2635 = vst [vmem:[%s4384_s20 + $0xc8] sm:$0xff] %v2593_v12  ;;  %v2329_v17 = vadd.f32 %v2328_v1, %v2240_v13  ;;  %v2074_v12 = vadd.f32 %v4964_v42, %v1985_v33  ;;  %v4965_v13 = vld [vmem:[#allocation128_spill] sm:$0xff] }
 0x426   : > { %v2418_v52 = vadd.f32 %v2417_v26, %v2329_v17  ;;  %v2424_v26 = vpop.f32.mrf.mxu3  ;;  %v2163_v38 = vadd.f32 %v4966_v19, %v2074_v12 }
 0x428   : > { %v2507_v31 = vadd.f32 %v2506_v11, %v2418_v52  ;;  %v2513_v14 = vpop.f32.mrf.mxu0  ;;  %v4963_v11 = vld [vmem:[#allocation102_spill] sm:$0xff] }
 0x429   : > { %v2161_v9 = vadd.f32 %v4963_v11, %v2072_v18 }
 0x42a   : > { %v2596_v48 = vadd.f32 %v2595_v37, %v2507_v31  ;;  %v2602_v37 = vpop.f32.mrf.mxu1 }
 0x42b   : > { %v2330_v5 = vpop.f32.mrf.mxu2  ;;  %v2250_v1 = vadd.f32 %v4965_v13, %v2161_v9 }
 0x42c   : > { %2636 = vst [vmem:[%s4384_s20 + $0xd0] sm:$0xff] %v2596_v48  ;;  %v2331_v60 = vadd.f32 %v2330_v5, %v2242_v23 }
 0x42e   : > { %v2420_v49 = vadd.f32 %v2419_v4, %v2331_v60  ;;  %v2427_v17 = vpop.f32.mrf.mxu3 }
 0x430   : > { %v2509_v36 = vadd.f32 %v2508_v44, %v2420_v49  ;;  %v2516_v53 = vpop.f32.mrf.mxu0  ;;  %v4967_v44 = vld [vmem:[#allocation131_spill] sm:$0xff] }
 0x431   : > { %v2252_v61 = vadd.f32 %v4967_v44, %v2163_v38 }
 0x432   : > { %v2598_v25 = vadd.f32 %v2597_v56, %v2509_v36  ;;  %v2605_v22 = vpop.f32.mrf.mxu1 }
 0x433   : > { %v2333_v59 = vpop.f32.mrf.mxu2 }
 0x434   : > { %2637 = vst [vmem:[%s4384_s20 + $0xd8] sm:$0xff] %v2598_v25  ;;  %v2334_v50 = vadd.f32 %v2333_v59, %v2245_v35 }
 0x436   : > { %v2423_v2 = vadd.f32 %v2422_v54, %v2334_v50  ;;  %v2429_v20 = vpop.f32.mrf.mxu3 }
 0x438   : > { %v2512_v58 = vadd.f32 %v2511_v46, %v2423_v2  ;;  %v2518_v56 = vpop.f32.mrf.mxu0 }
 0x43a   : > { %v2601_v32 = vadd.f32 %v2600_v16, %v2512_v58  ;;  %v2607_v60 = vpop.f32.mrf.mxu1 }
 0x43b   : > { %v2335_v39 = vpop.f32.mrf.mxu2 }
 0x43c   : > { %2638 = vst [vmem:[%s4384_s20 + $0xe0] sm:$0xff] %v2601_v32  ;;  %v2336_v15 = vadd.f32 %v2335_v39, %v2247_v57 }
 0x43e   : > { %v2425_v24 = vadd.f32 %v2424_v26, %v2336_v15 }
 0x440   : > { %v2514_v43 = vadd.f32 %v2513_v14, %v2425_v24 }
 0x442   : > { %v2603_v8 = vadd.f32 %v2602_v37, %v2514_v43 }
 0x443   : > { %v2338_v40 = vpop.f32.mrf.mxu2 }
 0x444   : > { %2639 = vst [vmem:[%s4384_s20 + $0xe8] sm:$0xff] %v2603_v8  ;;  %v2339_v51 = vadd.f32 %v2338_v40, %v2250_v1 }
 0x446   : > { %v2428_v52 = vadd.f32 %v2427_v17, %v2339_v51 }
 0x448   : > { %v2517_v4 = vadd.f32 %v2516_v53, %v2428_v52 }
 0x44a   : > { %v2606_v31 = vadd.f32 %v2605_v22, %v2517_v4 }
 0x44b   : > { %v2340_v30 = vpop.f32.mrf.mxu2 }
 0x44c   : > { %2640 = vst [vmem:[%s4384_s20 + $0xf0] sm:$0xff] %v2606_v31  ;;  %v2341_v48 = vadd.f32 %v2340_v30, %v2252_v61 }
 0x44e   : > { %v2430_v23 = vadd.f32 %v2429_v20, %v2341_v48 }
 0x450   : > { %v2519_v5 = vadd.f32 %v2518_v56, %v2430_v23 }
 0x452   : > { %v2608_v55 = vadd.f32 %v2607_v60, %v2519_v5 }
 0x454   : > { %2641 = vst [vmem:[%s4384_s20 + $0xf8] sm:$0xff] %v2608_v55 }
 0x455   : > { %3336 = shalt.err (!%p3333_p12)
}
 0x456   : > { %s3387_s19 = smov 128   ;;  %s3388_s20 = smov 8  }
 0x457   : > { %3188 = dma.vmem_to_hbm [thread:$0]  (%p3491_p7), %s2656_s13, 4096, %s2658_s27, %s2643_s25, %s3387_s19, %s3387_s19, %s3388_s20  }
 0x458 PF: > { %s2672_s14 = sand.u32 1, %s3367_s21   ;;  %p4968_p13 = scmp.ge.s32.totalorder %s3379_s24, 2 }
 0x459   : > { %s2673_s7 = scalar_lea.sflag [#allocation5], %s2672_s14 }
 0x45a   : > { %p3199_p0 = pnand %p4968_p13, %p3459_p6 }
 0x45c   : > { %p3200_p3 = pneg %p3199_p0 }
 0x45e   : > { %3362 = dma.done.wait (%p3200_p3), %s2673_s7, 4096  }
 0x45f   : > { %3364 = vsyncadd (%p3200_p3), %s2673_s7, 4294963200  ;;  %p20_p5 = scmp.ge.s32.totalorder %s3477_s11, 4   ;;  %s4969_s21 = smov %s3371_s22 }
 0x460   : > { %s4970_s22 = smov %s3375_s23  ;;  %s4971_s23 = smov %s3487_s16 }
 0x461   : > { %s4972_s24 = smov %s3477_s11  ;;  %22 = sbr.rel (!%p20_p5) target bundleno = 6 (0x6), region = 98 }
 0x466   :  { %2679 = vsyncpa [#allocation4], 1 }
 0x467   :  { %2681 = vsyncpa [#allocation4 + $0x1], 1 }
 0x468   :  { %2682 = vsyncpa [#allocation7], 1 }
 0x469   :  { %2683 = vsyncpa [#allocation5], 1 }
 0x46a   :  { %2685 = vsyncpa [#allocation5 + $0x1], 1 }

</bundles_post_ra>
